<compile_context>
chip_gen: v7x
topology: tpu7x:2x2x1
jax: 0.10.0
libtpu: 0.0.40
codegen_flags: <defaults>
</compile_context>

<pallas_src>
import numpy as np
import jax
import jax.numpy as jnp
from jax.experimental import pallas as pl
from jax.experimental.pallas import tpu as pltpu

PAD = 128          # lane-padded width used for all MLP layer slabs
N_LAYERS = 6       # build_mlp([32,64,64,64,32]) -> 6 Linear layers


# ----------------------------------------------------------------------------- parameters
def init_linear(key, fan_in, fan_out):
    kw, kb = jax.random.split(key)
    scale = 1.0 / np.sqrt(fan_in)
    w = jax.random.uniform(kw, (fan_in, fan_out), jnp.float32, -scale, scale)
    b = jax.random.uniform(kb, (1, fan_out), jnp.float32, -scale, scale)
    return w, b


def init_mlp(key, in_dim, out_dim, features=(32, 64, 64, 64, 32)):
    # TODO(synk): batch-norm branch of build_mlp not implemented (batch_norm=False here).
    dims = [in_dim] + list(features) + [out_dim]
    keys = jax.random.split(key, len(dims) - 1)
    layers = []
    for k, di, do in zip(keys, dims[:-1], dims[1:]):
        layers.extend(init_linear(k, di, do))
    return layers


def init_edgeconv_params(key, in_feat_x, out_feat_x, in_feat_en, out_feat_en, out_feat_D_en):
    k1, k2, k3, k4, k5 = jax.random.split(key, 5)
    params = []
    params.extend(init_linear(k1, in_feat_x, out_feat_x))                       # theta    [0:2]
    params.extend(init_linear(k2, in_feat_x, out_feat_x))                       # phi      [2:4]
    params.extend(init_mlp(k3, in_feat_en, out_feat_en))                        # theta_en [4:16]
    params.extend(init_mlp(k4, in_feat_en, out_feat_en))                        # phi_en   [16:28]
    params.extend(init_mlp(k5, 2 * in_feat_x + 2 * in_feat_en, out_feat_D_en))  # W        [28:40]
    return params


# ----------------------------------------------------------------------------- graph glue
def knn_neighbors(x, k):
    """kNN (excluding self) on positions x; returns (N, K=k-1) global src indices per dst."""
    N = x.shape[0]
    d2 = jnp.sum((x[:, None, :] - x[None, :, :]) ** 2, axis=-1)
    d2 = jnp.where(jnp.eye(N, dtype=bool), jnp.inf, d2)
    _, nbr = jax.lax.top_k(-d2, k - 1)
    return nbr


# ----------------------------------------------------------------------------- weight packing
def pack_params(params, Fx, Fe):
    """Pack the 40 PyTorch-layout (in,out) weights/biases into fused, lane-padded slabs.

    All per-edge branches consume the same kernel-built input
        H0 = [dst - src | dst | zeros]   (width 2*(Fx+Fe), padded to PAD lanes)
    with dst/src ordered [x | en] internally.
    """
    Fn = Fx + Fe
    theta_w, theta_b = np.asarray(params[0]), np.asarray(params[1])
    phi_w, phi_b = np.asarray(params[2]), np.asarray(params[3])
    te = [np.asarray(p) for p in params[4:16]]    # theta_en layers (w,b)*6
    pe = [np.asarray(p) for p in params[16:28]]   # phi_en   layers
    wl = [np.asarray(p) for p in params[28:40]]   # W        layers
    Ox = theta_b.shape[1]
    Oe = te[11].shape[1]
    Od = wl[11].shape[1]

    # --- fused theta/phi single linear:  m_x = dx @ theta_w + dst_x @ phi_w + (theta_b+phi_b)
    fx_w = np.zeros((PAD, Ox), np.float32)
    fx_w[0:Fx, :] = theta_w                    # acts on diff_x = dx
    fx_w[Fn:Fn + Fx, :] = phi_w                # acts on dst_x
    fx_b = (theta_b + phi_b).astype(np.float32)

    # --- theta_en (+) phi_en as one block-diagonal MLP; last layer sums the two branches
    en_w = np.zeros((N_LAYERS, PAD, PAD), np.float32)
    en_b = np.zeros((N_LAYERS, 1, PAD), np.float32)
    wt0, bt0, wp0, bp0 = te[0], te[1], pe[0], pe[1]
    t0 = wt0.shape[1]                                              # 32
    en_w[0, Fx:Fn, 0:t0] = wt0                                     # den     -> theta cols
    en_w[0, Fn + Fx:2 * Fn, t0:2 * t0] = wp0                       # dst_en  -> phi cols
    en_b[0, 0, 0:t0] = bt0[0]
    en_b[0, 0, t0:2 * t0] = bp0[0]
    for l in range(1, N_LAYERS - 1):                               # block-diag hidden layers
        wt, bt, wp, bp = te[2 * l], te[2 * l + 1], pe[2 * l], pe[2 * l + 1]
        ti, to = wt.shape
        pi, po = wp.shape
        en_w[l, 0:ti, 0:to] = wt
        en_w[l, ti:ti + pi, to:to + po] = wp
        en_b[l, 0, 0:to] = bt[0]
        en_b[l, 0, to:to + po] = bp[0]
    wt5, bt5, wp5, bp5 = te[10], te[11], pe[10], pe[11]
    ti = wt5.shape[0]                                              # 32
    en_w[5, 0:ti, 0:Oe] = wt5                                      # summed final layer
    en_w[5, ti:2 * ti, 0:Oe] = wp5
    en_b[5, 0, 0:Oe] = (bt5 + bp5)[0]

    # --- W MLP on m_edge = [src_x, src_en, dst_x, dst_en]; layer 0 re-expressed on H0
    #     (src = dst - diff):  medge @ W0 = diff @ (-W0_src) + dst @ (W0_src + W0_dst)
    sc_w = np.zeros((N_LAYERS, PAD, PAD), np.float32)
    sc_b = np.zeros((N_LAYERS, 1, PAD), np.float32)
    w0, b0 = wl[0], wl[1]                                          # (2*Fn, 32)
    o0 = w0.shape[1]
    w0_src, w0_dst = w0[:Fn], w0[Fn:]
    sc_w[0, 0:Fn, 0:o0] = -w0_src
    sc_w[0, Fn:2 * Fn, 0:o0] = w0_src + w0_dst
    sc_b[0, 0, 0:o0] = b0[0]
    for l in range(1, N_LAYERS):
        w_, b_ = wl[2 * l], wl[2 * l + 1]
        i_, o_ = w_.shape
        sc_w[l, 0:i_, 0:o_] = w_
        sc_b[l, 0, 0:o_] = b_[0]

    to_bf16 = lambda a: jnp.asarray(a).astype(jnp.bfloat16)
    return (to_bf16(fx_w), jnp.asarray(fx_b),
            to_bf16(en_w), jnp.asarray(en_b),
            to_bf16(sc_w), jnp.asarray(sc_b),
            Ox, Oe, Od)


# ----------------------------------------------------------------------------- pallas kernel
def edgeconv_pallas(x, en, params, k=5, tile_nodes=8):
    N, Fx = x.shape
    Fe = en.shape[1]
    Fn = Fx + Fe
    K = k - 1
    E = N * K

    TN = tile_nodes
    assert N % TN == 0 and (N // TN) >= 1
    TE = TN * K                                   # edges per grid step (dst-major layout)

    # kNN graph (plain-JAX glue) + flat dst-major src-index table for the in-kernel gather.
    nbr = knn_neighbors(x, k)                                     # (N, K) global src ids
    nbr_flat = nbr.reshape(E, 1).astype(jnp.int32)                # edge e = dst*K + j

    node_feat = jnp.concatenate([x, en], axis=1).astype(jnp.float32)   # (N, Fn) = [x | en]

    # constant helper matrices, hoisted out of the grid loop (feedback: no per-step iota/where)
    expand_np = np.zeros((TE, TN), np.float32)
    expand_np[np.arange(TE), np.arange(TE) // K] = 1.0            # broadcast dst rows -> edges
    avg_np = (expand_np.T / K).astype(np.float32)                 # mean over K edges -> node
    expand = jnp.asarray(expand_np)
    avg = jnp.asarray(avg_np)

    fx_w, fx_b, en_w, en_b, sc_w, sc_b, Ox, Oe, Od = pack_params(params, Fx, Fe)

    def kernel(nbr_r, nf_all_r, nf_tile_r, exp_r, avg_r,
               fxw_r, fxb_r, enw_r, enb_r, scw_r, scb_r,
               node_out_r, score_out_r):
        f32 = jnp.float32
        bf16 = jnp.bfloat16

        # ---- in-VMEM gather of per-edge src/dst node features (no HBM edge expansion) ----
        onehot = (nbr_r[...] ==
                  jax.lax.broadcasted_iota(jnp.int32, (TE, N), 1)).astype(f32)      # (TE, N)
        src = jnp.dot(onehot, nf_all_r[...], preferred_element_type=f32)            # (TE, Fn)
        dst = jnp.dot(exp_r[...], nf_tile_r[...], preferred_element_type=f32)       # (TE, Fn)

        # shared per-edge MLP input  H0 = [dst - src | dst | 0...]  (PAD lanes)
        h0 = jnp.concatenate(
            [dst - src, dst, jnp.zeros((TE, PAD - 2 * Fn), f32)], axis=1)            # (TE, PAD)
        h0_bf = h0.astype(bf16)

        def slab_mlp(w_r, b_r):
            h = h0_bf
            for li in range(N_LAYERS):
                y = jnp.dot(h, w_r[li], preferred_element_type=f32) + b_r[li]        # f32 acc
                if li < N_LAYERS - 1:
                    h = jnp.maximum(y, 0.0).astype(bf16)       # cast only at dot boundaries
                else:
                    h = y
            return h                                                                 # (TE, PAD)

        # m_x = theta(dst.x - src.x) + phi(dst.x)          (single fused bf16 linear)
        m_x = jnp.dot(h0_bf, fxw_r[...], preferred_element_type=f32) + fxb_r[...]    # (TE, Ox)
        # m_en = theta_en(den) + phi_en(dst.en)             (block-diag MLP, summed last layer)
        m_en = slab_mlp(enw_r, enb_r)[:, :Oe]                                         # (TE, Oe)
        # score = W([src.x, src.en, dst.x, dst.en])         (layer-0 re-expressed on H0)
        score = slab_mlp(scw_r, scb_r)[:, :Od]                                        # (TE, Od)

        # mean over the K incoming edges of each dst node (single aggregation matmul)
        msg = jnp.concatenate([m_x, m_en], axis=1)                                    # (TE, Ox+Oe)
        node_out_r[...] = jnp.dot(avg_r[...], msg, preferred_element_type=f32)        # (TN, Ox+Oe)
        # TODO(synk): score stays (TE, Od) (narrow lanes); a lane-dense (Od, E) transposed
        # layout would further speed the store path but is skipped for robustness.
        score_out_r[...] = score

    const2 = lambda shape: pl.BlockSpec(shape, lambda i: (0, 0))
    const3 = lambda shape: pl.BlockSpec(shape, lambda i: (0, 0, 0))

    grid_spec = pltpu.PrefetchScalarGridSpec(
        num_scalar_prefetch=0,
        grid=(N // TN,),
        in_specs=[
            pl.BlockSpec((TE, 1), lambda i: (i, 0)),          # nbr_flat (edge tile)
            pl.BlockSpec((N, Fn), lambda i: (0, 0)),          # node_feat, full (gather source)
            pl.BlockSpec((TN, Fn), lambda i: (i, 0)),         # node_feat, dst tile
            const2((TE, TN)),                                 # expand (constant)
            const2((TN, TE)),                                 # avg    (constant)
            const2((PAD, Ox)), const2((1, Ox)),               # fused theta/phi linear
            const3((N_LAYERS, PAD, PAD)), const3((N_LAYERS, 1, PAD)),   # en slab
            const3((N_LAYERS, PAD, PAD)), const3((N_LAYERS, 1, PAD)),   # W  slab
        ],
        out_specs=[
            pl.BlockSpec((TN, Ox + Oe), lambda i: (i, 0)),    # [node_x | node_en]
            pl.BlockSpec((TE, Od), lambda i: (i, 0)),         # edge scores (dst-major)
        ],
    )

    node_msg, score = pl.pallas_call(
        kernel,
        out_shape=(
            jax.ShapeDtypeStruct((N, Ox + Oe), jnp.float32),
            jax.ShapeDtypeStruct((E, Od), jnp.float32),
        ),
        grid_spec=grid_spec,
        compiler_params=pltpu.CompilerParams(dimension_semantics=("parallel",)),
    )(nbr_flat, node_feat, node_feat, expand, avg, fx_w, fx_b, en_w, en_b, sc_w, sc_b)

    return node_msg[:, :Ox], node_msg[:, Ox:], score, nbr


# ----------------------------------------------------------------------------- pure-JAX reference
def edgeconv_ref(x, en, params, k=5):
    N, Fx = x.shape
    Fe = en.shape[1]
    K = k - 1
    E = N * K
    nbr = knn_neighbors(x, k)

    src_x, src_en = x[nbr], en[nbr]                                # (N, K, F)
    dst_x = jnp.broadcast_to(x[:, None, :], (N, K, Fx))
    dst_en = jnp.broadcast_to(en[:, None, :], (N, K, Fe))
    dx = (dst_x - src_x).reshape(E, Fx)
    dstx = dst_x.reshape(E, Fx)
    den = (dst_en - src_en).reshape(E, Fe)
    dsten = dst_en.reshape(E, Fe)
    medge = jnp.concatenate([src_x, src_en, dst_x, dst_en], -1).reshape(E, 2 * Fx + 2 * Fe)

    def lin(h, w, b):
        return h @ w + b

    def mlp(h, layers):
        nl = len(layers) // 2
        for i in range(nl):
            h = lin(h, layers[2 * i], layers[2 * i + 1])
            if i < nl - 1:
                h = jnp.maximum(h, 0.0)
        return h

    m_x = lin(dx, params[0], params[1]) + lin(dstx, params[2], params[3])
    m_en = mlp(den, params[4:16]) + mlp(dsten, params[16:28])
    score = mlp(medge, params[28:40])
    node_x = m_x.reshape(N, K, -1).mean(axis=1)
    node_en = m_en.reshape(N, K, -1).mean(axis=1)
    return node_x, node_en, score


# ----------------------------------------------------------------------------- main
if __name__ == "__main__":
    key = jax.random.PRNGKey(0)
    kx, ke, kp = jax.random.split(key, 3)

    # EdgeConv(in_feat_x=4, out_feat_x=8, in_feat_en=4, out_feat_en=8, in_feat_D_en=?, out_feat_D_en=8)
    # (in_feat_D_en is unused in forward; forward overrides k to 5.)
    N, in_feat_x, in_feat_en = 16, 4, 4
    out_feat_x, out_feat_en, out_feat_D_en = 8, 8, 8

    x = jax.random.normal(kx, (N, in_feat_x), jnp.float32)     # g.ndata['x']
    en = jax.random.normal(ke, (N, in_feat_en), jnp.float32)   # g.ndata['en']
    # TODO(synk): g.ndata['idx'] is carried through unchanged and never used in compute.

    params = init_edgeconv_params(kp, in_feat_x, out_feat_x, in_feat_en, out_feat_en, out_feat_D_en)

    node_x, node_en, score, nbr = edgeconv_pallas(x, en, params, k=5, tile_nodes=8)
    jax.block_until_ready((node_x, node_en, score))

    rx, ren, rsc = edgeconv_ref(x, en, params, k=5)
    assert np.allclose(np.asarray(node_x), np.asarray(rx), rtol=1e-2, atol=1e-2)
    assert np.allclose(np.asarray(node_en), np.asarray(ren), rtol=1e-2, atol=1e-2)
    assert np.allclose(np.asarray(score), np.asarray(rsc), rtol=1e-2, atol=1e-2)

    print("KERNEL_OK")
</pallas_src>

<mosaic_0001>
module attributes {stable_mosaic.version = 11 : i64} {
  func.func @kernel(%arg0: i32, %arg1: memref<32x1xi32, #tpu.memory_space<vmem>>, %arg2: memref<16x8xf32, #tpu.memory_space<vmem>>, %arg3: memref<8x8xf32, #tpu.memory_space<vmem>>, %arg4: memref<32x8xf32, #tpu.memory_space<vmem>>, %arg5: memref<8x32xf32, #tpu.memory_space<vmem>>, %arg6: memref<128x8xbf16, #tpu.memory_space<vmem>>, %arg7: memref<1x8xf32, #tpu.memory_space<vmem>>, %arg8: memref<6x128x128xbf16, #tpu.memory_space<vmem>>, %arg9: memref<6x1x128xf32, #tpu.memory_space<vmem>>, %arg10: memref<6x128x128xbf16, #tpu.memory_space<vmem>>, %arg11: memref<6x1x128xf32, #tpu.memory_space<vmem>>, %arg12: memref<8x16xf32, #tpu.memory_space<vmem>>, %arg13: memref<32x8xf32, #tpu.memory_space<vmem>>) attributes {dimension_semantics = [#tpu.dimension_semantics<parallel>], iteration_bounds = array<i64: 2>, scalar_prefetch = 0 : i64, scratch_operands = 0 : i64, tpu.core_type = #tpu.core_type<tc>, window_params = [{transform_indices = @transform_0, window_bounds = array<i64: 32, 1>}, {pipeline_mode = #tpu.pipeline_mode<synchronous>, transform_indices = @transform_1, window_bounds = array<i64: 16, 8>}, {transform_indices = @transform_2, window_bounds = array<i64: 8, 8>}, {pipeline_mode = #tpu.pipeline_mode<synchronous>, transform_indices = @transform_3, window_bounds = array<i64: 32, 8>}, {pipeline_mode = #tpu.pipeline_mode<synchronous>, transform_indices = @transform_4, window_bounds = array<i64: 8, 32>}, {pipeline_mode = #tpu.pipeline_mode<synchronous>, transform_indices = @transform_5, window_bounds = array<i64: 128, 8>}, {pipeline_mode = #tpu.pipeline_mode<synchronous>, transform_indices = @transform_6, window_bounds = array<i64: 1, 8>}, {pipeline_mode = #tpu.pipeline_mode<synchronous>, transform_indices = @transform_7, window_bounds = array<i64: 6, 128, 128>}, {pipeline_mode = #tpu.pipeline_mode<synchronous>, transform_indices = @transform_8, window_bounds = array<i64: 6, 1, 128>}, {pipeline_mode = #tpu.pipeline_mode<synchronous>, transform_indices = @transform_9, window_bounds = array<i64: 6, 128, 128>}, {pipeline_mode = #tpu.pipeline_mode<synchronous>, transform_indices = @transform_10, window_bounds = array<i64: 6, 1, 128>}, {transform_indices = @transform_11, window_bounds = array<i64: 8, 16>}, {transform_indices = @transform_12, window_bounds = array<i64: 32, 8>}]} {
    %c0 = arith.constant 0 : index
    %c0_0 = arith.constant 0 : index
    %0 = vector.load %arg1[%c0, %c0_0] : memref<32x1xi32, #tpu.memory_space<vmem>>, vector<32x1xi32>
    %1 = tpu.iota {dimensions = array<i32: 1>} : vector<32x16xi32>
    %2 = vector.broadcast %0 : vector<32x1xi32> to vector<32x16xi32>
    %3 = arith.cmpi eq, %2, %1 : vector<32x16xi32>
    %4 = arith.extui %3 : vector<32x16xi1> to vector<32x16xi32>
    %5 = arith.sitofp %4 : vector<32x16xi32> to vector<32x16xf32>
    %c0_1 = arith.constant 0 : index
    %c0_2 = arith.constant 0 : index
    %6 = vector.load %arg2[%c0_1, %c0_2] : memref<16x8xf32, #tpu.memory_space<vmem>>, vector<16x8xf32>
    %cst = arith.constant dense<0.000000e+00> : vector<32x8xf32>
    %7 = tpu.matmul %5, %6, %cst {dimension_numbers = #tpu.dot_dimension_numbers<[1], [0], [0], [1], [0, 0, 1, 1], [], []>} : vector<32x16xf32>, vector<16x8xf32>, vector<32x8xf32> -> vector<32x8xf32>
    %c0_3 = arith.constant 0 : index
    %c0_4 = arith.constant 0 : index
    %8 = vector.load %arg4[%c0_3, %c0_4] : memref<32x8xf32, #tpu.memory_space<vmem>>, vector<32x8xf32>
    %c0_5 = arith.constant 0 : index
    %c0_6 = arith.constant 0 : index
    %9 = vector.load %arg3[%c0_5, %c0_6] : memref<8x8xf32, #tpu.memory_space<vmem>>, vector<8x8xf32>
    %cst_7 = arith.constant dense<0.000000e+00> : vector<32x8xf32>
    %10 = tpu.matmul %8, %9, %cst_7 {dimension_numbers = #tpu.dot_dimension_numbers<[1], [0], [0], [1], [0, 0, 1, 1], [], []>} : vector<32x8xf32>, vector<8x8xf32>, vector<32x8xf32> -> vector<32x8xf32>
    %11 = arith.subf %10, %7 : vector<32x8xf32>
    %cst_8 = arith.constant 0.000000e+00 : f32
    %12 = vector.broadcast %cst_8 : f32 to vector<32x112xf32>
    %13 = tpu.concatenate %11, %10, %12 in 1 : vector<32x8xf32>, vector<32x8xf32>, vector<32x112xf32> -> vector<32x128xf32>
    %14 = arith.truncf %13 : vector<32x128xf32> to vector<32x128xbf16>
    %c0_9 = arith.constant 0 : index
    %c0_10 = arith.constant 0 : index
    %15 = vector.load %arg6[%c0_9, %c0_10] : memref<128x8xbf16, #tpu.memory_space<vmem>>, vector<128x8xbf16>
    %cst_11 = arith.constant dense<0.000000e+00> : vector<32x8xf32>
    %16 = tpu.matmul %14, %15, %cst_11 {dimension_numbers = #tpu.dot_dimension_numbers<[1], [0], [0], [1], [0, 0, 1, 1], [], []>} : vector<32x128xbf16>, vector<128x8xbf16>, vector<32x8xf32> -> vector<32x8xf32>
    %c0_12 = arith.constant 0 : index
    %c0_13 = arith.constant 0 : index
    %17 = vector.load %arg7[%c0_12, %c0_13] : memref<1x8xf32, #tpu.memory_space<vmem>>, vector<1x8xf32>
    %18 = vector.broadcast %17 : vector<1x8xf32> to vector<32x8xf32>
    %19 = arith.addf %16, %18 : vector<32x8xf32>
    %c0_14 = arith.constant 0 : index
    %c0_15 = arith.constant 0 : index
    %c0_16 = arith.constant 0 : index
    %20 = vector.load %arg8[%c0_14, %c0_15, %c0_16] : memref<6x128x128xbf16, #tpu.memory_space<vmem>>, vector<1x128x128xbf16>
    %21 = vector.shape_cast %20 : vector<1x128x128xbf16> to vector<128x128xbf16>
    %cst_17 = arith.constant dense<0.000000e+00> : vector<32x128xf32>
    %22 = tpu.matmul %14, %21, %cst_17 {dimension_numbers = #tpu.dot_dimension_numbers<[1], [0], [0], [1], [0, 0, 1, 1], [], []>} : vector<32x128xbf16>, vector<128x128xbf16>, vector<32x128xf32> -> vector<32x128xf32>
    %c0_18 = arith.constant 0 : index
    %c0_19 = arith.constant 0 : index
    %c0_20 = arith.constant 0 : index
    %23 = vector.load %arg9[%c0_18, %c0_19, %c0_20] : memref<6x1x128xf32, #tpu.memory_space<vmem>>, vector<1x1x128xf32>
    %24 = vector.shape_cast %23 : vector<1x1x128xf32> to vector<1x128xf32>
    %25 = vector.broadcast %24 : vector<1x128xf32> to vector<32x128xf32>
    %26 = arith.addf %22, %25 : vector<32x128xf32>
    %cst_21 = arith.constant 0.000000e+00 : f32
    %27 = vector.broadcast %cst_21 : f32 to vector<32x128xf32>
    %28 = arith.maximumf %26, %27 : vector<32x128xf32>
    %29 = arith.truncf %28 : vector<32x128xf32> to vector<32x128xbf16>
    %c1 = arith.constant 1 : index
    %c0_22 = arith.constant 0 : index
    %c0_23 = arith.constant 0 : index
    %30 = vector.load %arg8[%c1, %c0_22, %c0_23] : memref<6x128x128xbf16, #tpu.memory_space<vmem>>, vector<1x128x128xbf16>
    %31 = vector.shape_cast %30 : vector<1x128x128xbf16> to vector<128x128xbf16>
    %cst_24 = arith.constant dense<0.000000e+00> : vector<32x128xf32>
    %32 = tpu.matmul %29, %31, %cst_24 {dimension_numbers = #tpu.dot_dimension_numbers<[1], [0], [0], [1], [0, 0, 1, 1], [], []>} : vector<32x128xbf16>, vector<128x128xbf16>, vector<32x128xf32> -> vector<32x128xf32>
    %c1_25 = arith.constant 1 : index
    %c0_26 = arith.constant 0 : index
    %c0_27 = arith.constant 0 : index
    %33 = vector.load %arg9[%c1_25, %c0_26, %c0_27] : memref<6x1x128xf32, #tpu.memory_space<vmem>>, vector<1x1x128xf32>
    %34 = vector.shape_cast %33 : vector<1x1x128xf32> to vector<1x128xf32>
    %35 = vector.broadcast %34 : vector<1x128xf32> to vector<32x128xf32>
    %36 = arith.addf %32, %35 : vector<32x128xf32>
    %cst_28 = arith.constant 0.000000e+00 : f32
    %37 = vector.broadcast %cst_28 : f32 to vector<32x128xf32>
    %38 = arith.maximumf %36, %37 : vector<32x128xf32>
    %39 = arith.truncf %38 : vector<32x128xf32> to vector<32x128xbf16>
    %c2 = arith.constant 2 : index
    %c0_29 = arith.constant 0 : index
    %c0_30 = arith.constant 0 : index
    %40 = vector.load %arg8[%c2, %c0_29, %c0_30] : memref<6x128x128xbf16, #tpu.memory_space<vmem>>, vector<1x128x128xbf16>
    %41 = vector.shape_cast %40 : vector<1x128x128xbf16> to vector<128x128xbf16>
    %cst_31 = arith.constant dense<0.000000e+00> : vector<32x128xf32>
    %42 = tpu.matmul %39, %41, %cst_31 {dimension_numbers = #tpu.dot_dimension_numbers<[1], [0], [0], [1], [0, 0, 1, 1], [], []>} : vector<32x128xbf16>, vector<128x128xbf16>, vector<32x128xf32> -> vector<32x128xf32>
    %c2_32 = arith.constant 2 : index
    %c0_33 = arith.constant 0 : index
    %c0_34 = arith.constant 0 : index
    %43 = vector.load %arg9[%c2_32, %c0_33, %c0_34] : memref<6x1x128xf32, #tpu.memory_space<vmem>>, vector<1x1x128xf32>
    %44 = vector.shape_cast %43 : vector<1x1x128xf32> to vector<1x128xf32>
    %45 = vector.broadcast %44 : vector<1x128xf32> to vector<32x128xf32>
    %46 = arith.addf %42, %45 : vector<32x128xf32>
    %cst_35 = arith.constant 0.000000e+00 : f32
    %47 = vector.broadcast %cst_35 : f32 to vector<32x128xf32>
    %48 = arith.maximumf %46, %47 : vector<32x128xf32>
    %49 = arith.truncf %48 : vector<32x128xf32> to vector<32x128xbf16>
    %c3 = arith.constant 3 : index
    %c0_36 = arith.constant 0 : index
    %c0_37 = arith.constant 0 : index
    %50 = vector.load %arg8[%c3, %c0_36, %c0_37] : memref<6x128x128xbf16, #tpu.memory_space<vmem>>, vector<1x128x128xbf16>
    %51 = vector.shape_cast %50 : vector<1x128x128xbf16> to vector<128x128xbf16>
    %cst_38 = arith.constant dense<0.000000e+00> : vector<32x128xf32>
    %52 = tpu.matmul %49, %51, %cst_38 {dimension_numbers = #tpu.dot_dimension_numbers<[1], [0], [0], [1], [0, 0, 1, 1], [], []>} : vector<32x128xbf16>, vector<128x128xbf16>, vector<32x128xf32> -> vector<32x128xf32>
    %c3_39 = arith.constant 3 : index
    %c0_40 = arith.constant 0 : index
    %c0_41 = arith.constant 0 : index
    %53 = vector.load %arg9[%c3_39, %c0_40, %c0_41] : memref<6x1x128xf32, #tpu.memory_space<vmem>>, vector<1x1x128xf32>
    %54 = vector.shape_cast %53 : vector<1x1x128xf32> to vector<1x128xf32>
    %55 = vector.broadcast %54 : vector<1x128xf32> to vector<32x128xf32>
    %56 = arith.addf %52, %55 : vector<32x128xf32>
    %cst_42 = arith.constant 0.000000e+00 : f32
    %57 = vector.broadcast %cst_42 : f32 to vector<32x128xf32>
    %58 = arith.maximumf %56, %57 : vector<32x128xf32>
    %59 = arith.truncf %58 : vector<32x128xf32> to vector<32x128xbf16>
    %c4 = arith.constant 4 : index
    %c0_43 = arith.constant 0 : index
    %c0_44 = arith.constant 0 : index
    %60 = vector.load %arg8[%c4, %c0_43, %c0_44] : memref<6x128x128xbf16, #tpu.memory_space<vmem>>, vector<1x128x128xbf16>
    %61 = vector.shape_cast %60 : vector<1x128x128xbf16> to vector<128x128xbf16>
    %cst_45 = arith.constant dense<0.000000e+00> : vector<32x128xf32>
    %62 = tpu.matmul %59, %61, %cst_45 {dimension_numbers = #tpu.dot_dimension_numbers<[1], [0], [0], [1], [0, 0, 1, 1], [], []>} : vector<32x128xbf16>, vector<128x128xbf16>, vector<32x128xf32> -> vector<32x128xf32>
    %c4_46 = arith.constant 4 : index
    %c0_47 = arith.constant 0 : index
    %c0_48 = arith.constant 0 : index
    %63 = vector.load %arg9[%c4_46, %c0_47, %c0_48] : memref<6x1x128xf32, #tpu.memory_space<vmem>>, vector<1x1x128xf32>
    %64 = vector.shape_cast %63 : vector<1x1x128xf32> to vector<1x128xf32>
    %65 = vector.broadcast %64 : vector<1x128xf32> to vector<32x128xf32>
    %66 = arith.addf %62, %65 : vector<32x128xf32>
    %cst_49 = arith.constant 0.000000e+00 : f32
    %67 = vector.broadcast %cst_49 : f32 to vector<32x128xf32>
    %68 = arith.maximumf %66, %67 : vector<32x128xf32>
    %69 = arith.truncf %68 : vector<32x128xf32> to vector<32x128xbf16>
    %c5 = arith.constant 5 : index
    %c0_50 = arith.constant 0 : index
    %c0_51 = arith.constant 0 : index
    %70 = vector.load %arg8[%c5, %c0_50, %c0_51] : memref<6x128x128xbf16, #tpu.memory_space<vmem>>, vector<1x128x128xbf16>
    %71 = vector.shape_cast %70 : vector<1x128x128xbf16> to vector<128x128xbf16>
    %cst_52 = arith.constant dense<0.000000e+00> : vector<32x128xf32>
    %72 = tpu.matmul %69, %71, %cst_52 {dimension_numbers = #tpu.dot_dimension_numbers<[1], [0], [0], [1], [0, 0, 1, 1], [], []>} : vector<32x128xbf16>, vector<128x128xbf16>, vector<32x128xf32> -> vector<32x128xf32>
    %c5_53 = arith.constant 5 : index
    %c0_54 = arith.constant 0 : index
    %c0_55 = arith.constant 0 : index
    %73 = vector.load %arg9[%c5_53, %c0_54, %c0_55] : memref<6x1x128xf32, #tpu.memory_space<vmem>>, vector<1x1x128xf32>
    %74 = vector.shape_cast %73 : vector<1x1x128xf32> to vector<1x128xf32>
    %75 = vector.broadcast %74 : vector<1x128xf32> to vector<32x128xf32>
    %76 = arith.addf %72, %75 : vector<32x128xf32>
    %77 = vector.extract_strided_slice %76 {offsets = [0, 0], sizes = [32, 8], strides = [1, 1]} : vector<32x128xf32> to vector<32x8xf32>
    %c0_56 = arith.constant 0 : index
    %c0_57 = arith.constant 0 : index
    %c0_58 = arith.constant 0 : index
    %78 = vector.load %arg10[%c0_56, %c0_57, %c0_58] : memref<6x128x128xbf16, #tpu.memory_space<vmem>>, vector<1x128x128xbf16>
    %79 = vector.shape_cast %78 : vector<1x128x128xbf16> to vector<128x128xbf16>
    %cst_59 = arith.constant dense<0.000000e+00> : vector<32x128xf32>
    %80 = tpu.matmul %14, %79, %cst_59 {dimension_numbers = #tpu.dot_dimension_numbers<[1], [0], [0], [1], [0, 0, 1, 1], [], []>} : vector<32x128xbf16>, vector<128x128xbf16>, vector<32x128xf32> -> vector<32x128xf32>
    %c0_60 = arith.constant 0 : index
    %c0_61 = arith.constant 0 : index
    %c0_62 = arith.constant 0 : index
    %81 = vector.load %arg11[%c0_60, %c0_61, %c0_62] : memref<6x1x128xf32, #tpu.memory_space<vmem>>, vector<1x1x128xf32>
    %82 = vector.shape_cast %81 : vector<1x1x128xf32> to vector<1x128xf32>
    %83 = vector.broadcast %82 : vector<1x128xf32> to vector<32x128xf32>
    %84 = arith.addf %80, %83 : vector<32x128xf32>
    %cst_63 = arith.constant 0.000000e+00 : f32
    %85 = vector.broadcast %cst_63 : f32 to vector<32x128xf32>
    %86 = arith.maximumf %84, %85 : vector<32x128xf32>
    %87 = arith.truncf %86 : vector<32x128xf32> to vector<32x128xbf16>
    %c1_64 = arith.constant 1 : index
    %c0_65 = arith.constant 0 : index
    %c0_66 = arith.constant 0 : index
    %88 = vector.load %arg10[%c1_64, %c0_65, %c0_66] : memref<6x128x128xbf16, #tpu.memory_space<vmem>>, vector<1x128x128xbf16>
    %89 = vector.shape_cast %88 : vector<1x128x128xbf16> to vector<128x128xbf16>
    %cst_67 = arith.constant dense<0.000000e+00> : vector<32x128xf32>
    %90 = tpu.matmul %87, %89, %cst_67 {dimension_numbers = #tpu.dot_dimension_numbers<[1], [0], [0], [1], [0, 0, 1, 1], [], []>} : vector<32x128xbf16>, vector<128x128xbf16>, vector<32x128xf32> -> vector<32x128xf32>
    %c1_68 = arith.constant 1 : index
    %c0_69 = arith.constant 0 : index
    %c0_70 = arith.constant 0 : index
    %91 = vector.load %arg11[%c1_68, %c0_69, %c0_70] : memref<6x1x128xf32, #tpu.memory_space<vmem>>, vector<1x1x128xf32>
    %92 = vector.shape_cast %91 : vector<1x1x128xf32> to vector<1x128xf32>
    %93 = vector.broadcast %92 : vector<1x128xf32> to vector<32x128xf32>
    %94 = arith.addf %90, %93 : vector<32x128xf32>
    %cst_71 = arith.constant 0.000000e+00 : f32
    %95 = vector.broadcast %cst_71 : f32 to vector<32x128xf32>
    %96 = arith.maximumf %94, %95 : vector<32x128xf32>
    %97 = arith.truncf %96 : vector<32x128xf32> to vector<32x128xbf16>
    %c2_72 = arith.constant 2 : index
    %c0_73 = arith.constant 0 : index
    %c0_74 = arith.constant 0 : index
    %98 = vector.load %arg10[%c2_72, %c0_73, %c0_74] : memref<6x128x128xbf16, #tpu.memory_space<vmem>>, vector<1x128x128xbf16>
    %99 = vector.shape_cast %98 : vector<1x128x128xbf16> to vector<128x128xbf16>
    %cst_75 = arith.constant dense<0.000000e+00> : vector<32x128xf32>
    %100 = tpu.matmul %97, %99, %cst_75 {dimension_numbers = #tpu.dot_dimension_numbers<[1], [0], [0], [1], [0, 0, 1, 1], [], []>} : vector<32x128xbf16>, vector<128x128xbf16>, vector<32x128xf32> -> vector<32x128xf32>
    %c2_76 = arith.constant 2 : index
    %c0_77 = arith.constant 0 : index
    %c0_78 = arith.constant 0 : index
    %101 = vector.load %arg11[%c2_76, %c0_77, %c0_78] : memref<6x1x128xf32, #tpu.memory_space<vmem>>, vector<1x1x128xf32>
    %102 = vector.shape_cast %101 : vector<1x1x128xf32> to vector<1x128xf32>
    %103 = vector.broadcast %102 : vector<1x128xf32> to vector<32x128xf32>
    %104 = arith.addf %100, %103 : vector<32x128xf32>
    %cst_79 = arith.constant 0.000000e+00 : f32
    %105 = vector.broadcast %cst_79 : f32 to vector<32x128xf32>
    %106 = arith.maximumf %104, %105 : vector<32x128xf32>
    %107 = arith.truncf %106 : vector<32x128xf32> to vector<32x128xbf16>
    %c3_80 = arith.constant 3 : index
    %c0_81 = arith.constant 0 : index
    %c0_82 = arith.constant 0 : index
    %108 = vector.load %arg10[%c3_80, %c0_81, %c0_82] : memref<6x128x128xbf16, #tpu.memory_space<vmem>>, vector<1x128x128xbf16>
    %109 = vector.shape_cast %108 : vector<1x128x128xbf16> to vector<128x128xbf16>
    %cst_83 = arith.constant dense<0.000000e+00> : vector<32x128xf32>
    %110 = tpu.matmul %107, %109, %cst_83 {dimension_numbers = #tpu.dot_dimension_numbers<[1], [0], [0], [1], [0, 0, 1, 1], [], []>} : vector<32x128xbf16>, vector<128x128xbf16>, vector<32x128xf32> -> vector<32x128xf32>
    %c3_84 = arith.constant 3 : index
    %c0_85 = arith.constant 0 : index
    %c0_86 = arith.constant 0 : index
    %111 = vector.load %arg11[%c3_84, %c0_85, %c0_86] : memref<6x1x128xf32, #tpu.memory_space<vmem>>, vector<1x1x128xf32>
    %112 = vector.shape_cast %111 : vector<1x1x128xf32> to vector<1x128xf32>
    %113 = vector.broadcast %112 : vector<1x128xf32> to vector<32x128xf32>
    %114 = arith.addf %110, %113 : vector<32x128xf32>
    %cst_87 = arith.constant 0.000000e+00 : f32
    %115 = vector.broadcast %cst_87 : f32 to vector<32x128xf32>
    %116 = arith.maximumf %114, %115 : vector<32x128xf32>
    %117 = arith.truncf %116 : vector<32x128xf32> to vector<32x128xbf16>
    %c4_88 = arith.constant 4 : index
    %c0_89 = arith.constant 0 : index
    %c0_90 = arith.constant 0 : index
    %118 = vector.load %arg10[%c4_88, %c0_89, %c0_90] : memref<6x128x128xbf16, #tpu.memory_space<vmem>>, vector<1x128x128xbf16>
    %119 = vector.shape_cast %118 : vector<1x128x128xbf16> to vector<128x128xbf16>
    %cst_91 = arith.constant dense<0.000000e+00> : vector<32x128xf32>
    %120 = tpu.matmul %117, %119, %cst_91 {dimension_numbers = #tpu.dot_dimension_numbers<[1], [0], [0], [1], [0, 0, 1, 1], [], []>} : vector<32x128xbf16>, vector<128x128xbf16>, vector<32x128xf32> -> vector<32x128xf32>
    %c4_92 = arith.constant 4 : index
    %c0_93 = arith.constant 0 : index
    %c0_94 = arith.constant 0 : index
    %121 = vector.load %arg11[%c4_92, %c0_93, %c0_94] : memref<6x1x128xf32, #tpu.memory_space<vmem>>, vector<1x1x128xf32>
    %122 = vector.shape_cast %121 : vector<1x1x128xf32> to vector<1x128xf32>
    %123 = vector.broadcast %122 : vector<1x128xf32> to vector<32x128xf32>
    %124 = arith.addf %120, %123 : vector<32x128xf32>
    %cst_95 = arith.constant 0.000000e+00 : f32
    %125 = vector.broadcast %cst_95 : f32 to vector<32x128xf32>
    %126 = arith.maximumf %124, %125 : vector<32x128xf32>
    %127 = arith.truncf %126 : vector<32x128xf32> to vector<32x128xbf16>
    %c5_96 = arith.constant 5 : index
    %c0_97 = arith.constant 0 : index
    %c0_98 = arith.constant 0 : index
    %128 = vector.load %arg10[%c5_96, %c0_97, %c0_98] : memref<6x128x128xbf16, #tpu.memory_space<vmem>>, vector<1x128x128xbf16>
    %129 = vector.shape_cast %128 : vector<1x128x128xbf16> to vector<128x128xbf16>
    %cst_99 = arith.constant dense<0.000000e+00> : vector<32x128xf32>
    %130 = tpu.matmul %127, %129, %cst_99 {dimension_numbers = #tpu.dot_dimension_numbers<[1], [0], [0], [1], [0, 0, 1, 1], [], []>} : vector<32x128xbf16>, vector<128x128xbf16>, vector<32x128xf32> -> vector<32x128xf32>
    %c5_100 = arith.constant 5 : index
    %c0_101 = arith.constant 0 : index
    %c0_102 = arith.constant 0 : index
    %131 = vector.load %arg11[%c5_100, %c0_101, %c0_102] : memref<6x1x128xf32, #tpu.memory_space<vmem>>, vector<1x1x128xf32>
    %132 = vector.shape_cast %131 : vector<1x1x128xf32> to vector<1x128xf32>
    %133 = vector.broadcast %132 : vector<1x128xf32> to vector<32x128xf32>
    %134 = arith.addf %130, %133 : vector<32x128xf32>
    %135 = vector.extract_strided_slice %134 {offsets = [0, 0], sizes = [32, 8], strides = [1, 1]} : vector<32x128xf32> to vector<32x8xf32>
    %136 = tpu.concatenate %19, %77 in 1 : vector<32x8xf32>, vector<32x8xf32> -> vector<32x16xf32>
    %c0_103 = arith.constant 0 : index
    %c0_104 = arith.constant 0 : index
    %137 = vector.load %arg5[%c0_103, %c0_104] : memref<8x32xf32, #tpu.memory_space<vmem>>, vector<8x32xf32>
    %cst_105 = arith.constant dense<0.000000e+00> : vector<8x16xf32>
    %138 = tpu.matmul %137, %136, %cst_105 {dimension_numbers = #tpu.dot_dimension_numbers<[1], [0], [0], [1], [0, 0, 1, 1], [], []>} : vector<8x32xf32>, vector<32x16xf32>, vector<8x16xf32> -> vector<8x16xf32>
    %c0_106 = arith.constant 0 : index
    %c0_107 = arith.constant 0 : index
    %139 = vector.load %arg12[%c0_106, %c0_107] : memref<8x16xf32, #tpu.memory_space<vmem>>, vector<8x16xf32>
    tpu.vector_store %arg12[%c0_106, %c0_107], %138 {strides = array<i32>} : memref<8x16xf32, #tpu.memory_space<vmem>>, vector<8x16xf32>,
    %c0_108 = arith.constant 0 : index
    %c0_109 = arith.constant 0 : index
    %140 = vector.load %arg13[%c0_108, %c0_109] : memref<32x8xf32, #tpu.memory_space<vmem>>, vector<32x8xf32>
    tpu.vector_store %arg13[%c0_108, %c0_109], %135 {strides = array<i32>} : memref<32x8xf32, #tpu.memory_space<vmem>>, vector<32x8xf32>,
    return
  }
  func.func @transform_0(%arg0: i32) -> (i32, i32) {
    %c0_i32 = arith.constant 0 : i32
    %c0_i32_0 = arith.constant 0 : i32
    return %arg0, %c0_i32 : i32, i32
  }
  func.func @transform_1(%arg0: i32) -> (i32, i32) {
    %c0_i32 = arith.constant 0 : i32
    %c0_i32_0 = arith.constant 0 : i32
    %c0_i32_1 = arith.constant 0 : i32
    return %c0_i32, %c0_i32_0 : i32, i32
  }
  func.func @transform_2(%arg0: i32) -> (i32, i32) {
    %c0_i32 = arith.constant 0 : i32
    %c0_i32_0 = arith.constant 0 : i32
    return %arg0, %c0_i32 : i32, i32
  }
  func.func @transform_3(%arg0: i32) -> (i32, i32) {
    %c0_i32 = arith.constant 0 : i32
    %c0_i32_0 = arith.constant 0 : i32
    %c0_i32_1 = arith.constant 0 : i32
    return %c0_i32, %c0_i32_0 : i32, i32
  }
  func.func @transform_4(%arg0: i32) -> (i32, i32) {
    %c0_i32 = arith.constant 0 : i32
    %c0_i32_0 = arith.constant 0 : i32
    %c0_i32_1 = arith.constant 0 : i32
    return %c0_i32, %c0_i32_0 : i32, i32
  }
  func.func @transform_5(%arg0: i32) -> (i32, i32) {
    %c0_i32 = arith.constant 0 : i32
    %c0_i32_0 = arith.constant 0 : i32
    %c0_i32_1 = arith.constant 0 : i32
    return %c0_i32, %c0_i32_0 : i32, i32
  }
  func.func @transform_6(%arg0: i32) -> (i32, i32) {
    %c0_i32 = arith.constant 0 : i32
    %c0_i32_0 = arith.constant 0 : i32
    %c0_i32_1 = arith.constant 0 : i32
    return %c0_i32, %c0_i32_0 : i32, i32
  }
  func.func @transform_7(%arg0: i32) -> (i32, i32, i32) {
    %c0_i32 = arith.constant 0 : i32
    %c0_i32_0 = arith.constant 0 : i32
    %c0_i32_1 = arith.constant 0 : i32
    %c0_i32_2 = arith.constant 0 : i32
    return %c0_i32, %c0_i32_0, %c0_i32_1 : i32, i32, i32
  }
  func.func @transform_8(%arg0: i32) -> (i32, i32, i32) {
    %c0_i32 = arith.constant 0 : i32
    %c0_i32_0 = arith.constant 0 : i32
    %c0_i32_1 = arith.constant 0 : i32
    %c0_i32_2 = arith.constant 0 : i32
    return %c0_i32, %c0_i32_0, %c0_i32_1 : i32, i32, i32
  }
  func.func @transform_9(%arg0: i32) -> (i32, i32, i32) {
    %c0_i32 = arith.constant 0 : i32
    %c0_i32_0 = arith.constant 0 : i32
    %c0_i32_1 = arith.constant 0 : i32
    %c0_i32_2 = arith.constant 0 : i32
    return %c0_i32, %c0_i32_0, %c0_i32_1 : i32, i32, i32
  }
  func.func @transform_10(%arg0: i32) -> (i32, i32, i32) {
    %c0_i32 = arith.constant 0 : i32
    %c0_i32_0 = arith.constant 0 : i32
    %c0_i32_1 = arith.constant 0 : i32
    %c0_i32_2 = arith.constant 0 : i32
    return %c0_i32, %c0_i32_0, %c0_i32_1 : i32, i32, i32
  }
  func.func @transform_11(%arg0: i32) -> (i32, i32) {
    %c0_i32 = arith.constant 0 : i32
    %c0_i32_0 = arith.constant 0 : i32
    return %arg0, %c0_i32 : i32, i32
  }
  func.func @transform_12(%arg0: i32) -> (i32, i32) {
    %c0_i32 = arith.constant 0 : i32
    %c0_i32_0 = arith.constant 0 : i32
    return %arg0, %c0_i32 : i32, i32
  }
}

</mosaic_0001>

<bundles_post_ra>
// kernel: tpu_custom_call.1
= control target key start
LH: loop header
LB: loop body
LE: loop exit
PB: predicated region body
PF: predicated region fallthrough
CT: control target
= control target key end

     0   :  { %18 = vsyncpa [#allocation3], 0  ;;  %s3989_s0 = inlined_call_operand.vmem [shape: s32[64,1], index: 0, kind: input, shape index: {}]   ;;  %s3990_s1 = inlined_call_operand.vmem [shape: f32[16,8], index: 1, kind: input, shape index: {}]   ;;  %s3991_s2 = inlined_call_operand.vmem [shape: f32[16,8], index: 2, kind: input, shape index: {}]   ;;  %s3992_s3 = inlined_call_operand.vmem [shape: f32[32,8], index: 3, kind: input, shape index: {}]   ;;  %s3993_s4 = inlined_call_operand.vmem [shape: f32[8,32], index: 4, kind: input, shape index: {}]   ;;  %s3994_s5 = inlined_call_operand.vmem [shape: bf16[128,8], index: 5, kind: input, shape index: {}]   ;;  %s3995_s6 = inlined_call_operand.vmem [shape: f32[1,8], index: 6, kind: input, shape index: {}]   ;;  %s3996_s7 = inlined_call_operand.hbm [shape: bf16[6,128,128], index: 7, kind: input, shape index: {}]   ;;  %s3997_s8 = inlined_call_operand.vmem [shape: f32[6,1,128], index: 8, kind: input, shape index: {}]   ;;  %s3998_s9 = inlined_call_operand.hbm [shape: bf16[6,128,128], index: 9, kind: input, shape index: {}]   ;;  %s3999_s10 = inlined_call_operand.vmem [shape: f32[6,1,128], index: 10, kind: input, shape index: {}]   ;;  %s4000_s11 = inlined_call_operand.hbm [shape: f32[16,16], index: 11, kind: output, shape index: {0}]   ;;  %s4001_s12 = inlined_call_operand.vmem [shape: f32[64,8], index: 12, kind: output, shape index: {1}]  }
   0x1   :  { %19 = vsyncpa [#allocation6], 0 }
   0x2   :  { %20 = vsyncpa [#allocation4], 0 }
   0x3   :  { %22 = vsyncpa [#allocation4 + $0x1], 0  ;;  %s3637_s21 = smov 0   ;;  %s3639_s22 = smov 0  }
   0x4   :  { %s3641_s23 = smov 0   ;;  %s3643_s24 = smov 0  }
   0x5 LB: > { %4011 = sst [smem:[#allocation11_spill]] %s3548_s21  ;;  %s3658_s25 = sadd.s32 4294967295, %s3560_s24   ;;  %s3560_s24 = sphi %s3643_s24, %s4033_s24   ;;  %s3556_s23 = sphi %s3641_s23, %s4035_s23   ;;  %s3552_s22 = sphi %s3639_s22, %s4037_s22   ;;  %s3548_s21 = sphi %s3637_s21, %s4036_s21  }
   0x6   : > { %4012 = sst [smem:[#allocation12_spill]] %s3556_s23  ;;  %s2620_s26 = sadd.s32 4294967294, %s3560_s24  }
   0x7   : > { %4013 = sst [smem:[#allocation13_spill]] %s3560_s24  ;;  %s3662_s27 = sadd.s32 1, %s3560_s24  }
   0x8   : > { %4014 = sst [smem:[#allocation14_spill]] %s3662_s27  ;;  %s276_s28 = sadd.s32 1, %s3556_s23 }
   0x9   : > { %s273_s29 = ssub.s32 %s3560_s24, %s3662_s27  ;;  %p286_p0 = scmp.ne.s32.totalorder %s3556_s23, %s3552_s22 }
   0xa   : > { %p274_p1 = scmp.eq.s32.totalorder %s273_s29, 0  ;;  %p287_p2 = scmp.eq.s32.totalorder %s3658_s25, 1 }
   0xb   : > { %p292_p3 = scmp.ne.s32.totalorder %s3552_s22, %s3548_s21  ;;  %p293_p4 = scmp.eq.s32.totalorder %s2620_s26, 1 }
   0xc   : > { %s3673_s30 = scalar_select %p274_p1, %s3556_s23, %s276_s28  }
   0xd   : > { %p3675_p5 = por %p287_p2, %p286_p0  ;;  %p3679_p6 = por %p293_p4, %p292_p3 }
   0xe   : > { %4015 = sst [smem:[#allocation15_spill]] %s3673_s30  ;;  %p2621_p7 = scmp.ge.s32.totalorder %s3560_s24, 1 }
   0xf   : > { %s4016_s13 = scalar_select %p3675_p5, 1, 0 }
  0x10   : > { %s4017_s14 = scalar_select %p3679_p6, 1, 0 }
  0x11   : > { %p326_p8 = scmp.lt.s32.totalorder %s3560_s24, 3  ;;  %p4005_p9 = scmp.eq.s32.totalorder %s3658_s25, 0 }
  0x12   : > { %4018 = sst [smem:[#allocation16_spill]] %s4017_s14  ;;  %s3562_s16 = smov [#allocation2]  }
  0x13   : > { %p3686_p10 = pnand %p2621_p7, %p326_p8  ;;  %s353_s17 = sshll.u32 %s3562_s16, 4  ;;  %s354_s17 = int_to_ptr.vmem [resolvable:$true] %s353_s17 }
  0x14   : > { %s3563_s19 = smov [#allocation5]   ;;  %s3434_s29 = scalar_lea.hbm %s3996_s7, 6144 }
  0x15   : > { %s4019_s15 = scalar_select %p3686_p10, 1, 0 }
  0x16   : > { %p3251_p11 = pneg %p3686_p10  ;;  %s369_s20 = sshll.u32 %s3563_s19, 4  ;;  %s3698_s20 = int_to_ptr.vmem [resolvable:$true] %s369_s20 }
  0x17   : > { %p3435_p13 = scmp.ne.s32.totalorder %s3996_s7, %s3434_s29  ;;  %p3441_p3 = scmp.lt.u32.totalorder %s3434_s29, %s3996_s7 }
  0x18   : > { %p3694_p12 = pnand %p4005_p9, %p3251_p11 }
  0x1a   : > { %p3436_p0 = pneg %p3694_p12 }
  0x1c   : > { %p3437_p1 = pnand %p3436_p0, %p3435_p13 }
  0x1e   : > { %p3438_p2 = pneg %p3437_p1 }
  0x20   : > { %p3443_p4 = pnand %p3441_p3, %p3438_p2 }
  0x22   : > { %3446 = shalt.err (!%p3443_p4)
}
  0x23   : > { %s3447_s19 = scalar_lea.vmem %s354_s17, 6144  ;;  %p3455_p9 = scmp.lt.s32.totalorder %s354_s17, %s354_s17 }
  0x24   : > { %p3448_p7 = scmp.ne.s32.totalorder %s354_s17, %s3447_s19  ;;  %p3456_p6 = scmp.lt.s32.totalorder %s3447_s19, %s3447_s19 }
  0x26   : > { %p3450_p8 = pnand %p3448_p7, %p3436_p0  ;;  %p3457_p5 = por %p3456_p6, %p3455_p9 }
  0x28   : > { %p3451_p11 = pneg %p3450_p8 }
  0x2a   : > { %p3458_p10 = pnand %p3457_p5, %p3451_p11 }
  0x2c   : > { %3461 = shalt.err (!%p3458_p10)
}
  0x2d   : > { %s3564_s30 = smov 64   ;;  %s3565_s26 = smov 4  }
  0x2e   : > { %3254 = dma.hbm_to_vmem [thread:$0]  (!%p3694_p12), %s3996_s7, 6144, %s354_s17, [#allocation3], %s3564_s30, %s3564_s30, %s3565_s26  }
  0x2f   : > { %s3462_s16 = scalar_lea.hbm %s3998_s9, 6144 }
  0x30   : > { %p3463_p13 = scmp.ne.s32.totalorder %s3998_s9, %s3462_s16  ;;  %p3469_p9 = scmp.lt.u32.totalorder %s3462_s16, %s3998_s9 }
  0x32   : > { %p3465_p5 = pnand %p3463_p13, %p3436_p0 }
  0x34   : > { %p3466_p6 = pneg %p3465_p5 }
  0x36   : > { %p3471_p10 = pnand %p3469_p9, %p3466_p6 }
  0x38   : > { %3474 = shalt.err (!%p3471_p10)
}
  0x39   : > { %s3475_s17 = scalar_lea.vmem %s3698_s20, 6144  ;;  %p3483_p4 = scmp.lt.s32.totalorder %s3698_s20, %s3698_s20 }
  0x3a   : > { %p3476_p1 = scmp.ne.s32.totalorder %s3698_s20, %s3475_s17  ;;  %p3484_p7 = scmp.lt.s32.totalorder %s3475_s17, %s3475_s17 }
  0x3c   : > { %p3478_p2 = pnand %p3476_p1, %p3436_p0  ;;  %p3485_p8 = por %p3484_p7, %p3483_p4 }
  0x3e   : > { %p3479_p3 = pneg %p3478_p2 }
  0x40   : > { %p3486_p11 = pnand %p3485_p8, %p3479_p3 }
  0x42   : > { %3489 = shalt.err (!%p3486_p11)
}
  0x43   : > { %3257 = dma.hbm_to_vmem [thread:$0]  (!%p3694_p12), %s3998_s9, 6144, %s3698_s20, [#allocation6], %s3564_s30, %s3564_s30, %s3565_s26  }
  0x44   : > { %p4021_p13 = scmp.ne.s32.totalorder %s4019_s15, 0 }
  0x45   : > { %p4022_p5 = scmp.eq.s32.totalorder (!%p4021_p13), %s3658_s25, 0 }
  0x46   : > { %404 = sbr.rel (%p4021_p13) target bundleno = 2818 (0xb02), region = 64 }
  0x4d   : > { %3535 = dma.done.wait (%p4022_p5), [#allocation3], 6144   ;;  %p4023_p0 = pmov %p4022_p5 }
  0x4f   : > { %3537 = vsyncadd (%p4023_p0), [#allocation3], 4294961152  ;;  %p4024_p6 = pmov %p4023_p0 }
  0x50   : > { %p4025_p9 = pmov %p4023_p0 }
  0x51   : > { %3539 = dma.done.wait (%p4024_p6), [#allocation6], 6144  }
  0x52   : > { %3541 = vsyncadd (%p4025_p9), [#allocation6], 4294961152  ;;  %s2629_s14 = sshll.u32 %s3658_s25, 2  ;;  %v3566_v0 = vmov 0   ;;  %v506_v4 = vld [vmem:[%s3990_s1] sm:$0xff]  ;;  %v507_v5 = vld [vmem:[%s3990_s1 + $0x8] sm:$0xff]  ;;  %v480_v9 = vlaneseq }
  0x53   : > { %3309 = vset.pattern.permute.xlu1 %v3566_v0  ;;  %3308 = vset.pattern.permute.xlu0 %v3566_v0  ;;  %p460_p12 = scmp.lt.s32.totalorder %s2629_s14, 7  ;;  %v3231_v7 = vpack.c.bf16 %v507_v5, %v506_v4  ;;  %p465_p10 = scmp.lt.s32.totalorder %s3658_s25, 1  ;;  %vm508_vm0 = vcmask 130048   ;;  %v3567_v13 = vmov 0.0   ;;  %v606_v19 = vld [vmem:[%s3992_s3] sm:$0xff]  ;;  %vm611_vm5 = vcmask 64512  }
  0x54   : > { %v481_v10 = vand.u32 127, %v480_v9  ;;  %v607_v21 = vld [vmem:[%s3992_s3 + $0x8] sm:$0xff]  ;;  %v608_v22 = vld [vmem:[%s3992_s3 + $0x10] sm:$0xff]  ;;  %v609_v23 = vld [vmem:[%s3992_s3 + $0x18] sm:$0xff]  ;;  %s3568_s17 = smov 8   ;;  %vm2400_vm7 = vcmask 261120  }
  0x55   : > { %s4039_s14 = smov (!%p460_p12, %s2629_s14), 7  ;;  %3232 = vmatprep.subr.bf16.mxu0 %v3231_v7  ;;  %v3330_v24 = vld [vmem:[%s3994_s5] sm:$0xff]   ;;  %v3332_v26 = vld [vmem:[%s3994_s5 + $0x8] sm:$0xff]   ;;  %v3334_v28 = vld [vmem:[%s3994_s5 + $0x10] sm:$0xff]   ;;  %vm3570_vm8 = vmmov 0   ;;  %s449_s24 = sand.u32 1, %s3552_s22  }
  0x56   : > { %s2630_s15 = sshll.u32 %s4039_s14, 3  ;;  %3234 = vmatpush3.bf16.msra.mxu0 %v3231_v7  ;;  %v3331_v25 = vld [vmem:[#allocation2] sm:$0xff]   ;;  %v3333_v27 = vld [vmem:[#allocation2 + $0x8] sm:$0xff]   ;;  %2960 = vmatprep.subr.bf16.mxu1 %v3330_v24  ;;  %v3335_v29 = vld [vmem:[#allocation2 + $0x10] sm:$0xff]   ;;  %s2628_s18 = sshll.u32 %s449_s24, 3 }
  0x57   : > { %s463_s30 = scalar_lea.vmem %s3989_s0, %s2630_s15  ;;  %2961 = vmatpush3.bf16.msra.mxu1 %v3330_v24  ;;  %v3336_v30 = vld [vmem:[%s3994_s5 + $0x18] sm:$0xff]   ;;  %v3338_v32 = vld [vmem:[%s3994_s5 + $0x20] sm:$0xff]   ;;  %v3340_v34 = vld [vmem:[%s3994_s5 + $0x28] sm:$0xff]   ;;  %s451_s20 = scalar_lea.vmem [#allocation7], %s2628_s18 }
  0x58   : > { %v478_v1 = vld [vmem:[%s463_s30 + $0x10] sm:$0xff]  ;;  %v476_v2 = vld [vmem:[%s463_s30] sm:$0xff]  ;;  %v479_v3 = vld [vmem:[%s463_s30 + $0x18] sm:$0xff]  ;;  %s466_s29 = scalar_select %p465_p10, %s3658_s25, 1  ;;  %2962 = vmatprep.subr.bf16.mxu1 %v3332_v26 }
  0x59   : > { %489 = vperm.xlu1 %3309, %v478_v1   ;;  %483 = vperm.xlu0 %3308, %v476_v2   ;;  %v477_v6 = vld [vmem:[%s463_s30 + $0x8] sm:$0xff]  ;;  %v3337_v31 = vld [vmem:[#allocation2 + $0x18] sm:$0xff]   ;;  %v3339_v33 = vld [vmem:[#allocation2 + $0x20] sm:$0xff]   ;;  %s2498_s30 = sshll.u32 %s451_s20, 4  ;;  %s2480_s28 = scalar_lea.sflag [#allocation4], %s449_s24  ;;  %s2499_s30 = int_to_ptr.vmem [resolvable:$true] %s2498_s30 }
  0x5a   : > { %s2631_s16 = sshll.u32 %s466_s29, 3  ;;  %v3341_v35 = vld [vmem:[#allocation2 + $0x28] sm:$0xff]   ;;  %v3342_v36 = vld [vmem:[%s3994_s5 + $0x30] sm:$0xff]   ;;  %v3344_v40 = vld [vmem:[%s3994_s5 + $0x38] sm:$0xff]   ;;  %s3490_s29 = scalar_lea.vmem %s2499_s30, 128 }
  0x5b   : > { %s468_s21 = scalar_lea.vmem %s3991_s2, %s2631_s16  ;;  %2963 = vmatpush3.bf16.msra.mxu1 %v3332_v26  ;;  %v3343_v37 = vld [vmem:[#allocation2 + $0x30] sm:$0xff]   ;;  %v3345_v41 = vld [vmem:[#allocation2 + $0x38] sm:$0xff]   ;;  %v3346_v45 = vld [vmem:[#allocation2 + $0x40] sm:$0xff]   ;;  %p3491_p1 = scmp.ne.s32.totalorder %s2499_s30, %s3490_s29 }
  0x5c   : > { %v610_v8 = vld [vmem:[%s468_s21] sm:$0xff]  ;;  %2964 = vmatprep.subr.bf16.mxu1 %v3334_v28  ;;  %vm3831_vm6 = vmpackc.low %vm508_vm0, %vm508_vm0  ;;  %v3347_v4 = vld [vmem:[#allocation2 + $0x48] sm:$0xff]   ;;  %p4028_p2 = scmp.ne.s32.totalorder %s4016_s13, 0  ;;  %s3571_s16 = smov [#allocation7]  }
  0x5d   : > { %492 = vperm.xlu1 %3309, %v479_v3   ;;  %486 = vperm.xlu0 %3308, %v477_v6   ;;  %v3348_v5 = vld [vmem:[#allocation2 + $0x50] sm:$0xff]   ;;  %v3349_v6 = vld [vmem:[#allocation2 + $0x58] sm:$0xff]   ;;  %v3350_v7 = vld [vmem:[#allocation2 + $0x60] sm:$0xff]   ;;  %s3494_s19 = sshll.u32 %s3571_s16, 4  ;;  %s3495_s19 = int_to_ptr.vmem [resolvable:$false] %s3494_s19 }
  0x5e   : > { %2952 = vmatprep.subr.mxu0 %v610_v8  ;;  %v3352_v9 = vld [vmem:[#allocation2 + $0x70] sm:$0xff]   ;;  %p3492_p3 = pnand %p3491_p1, %p4028_p2  ;;  %s3496_s21 = scalar_lea.vmem %s3495_s19, 256 }
  0x5f   : > { %2965 = vmatpush3.bf16.msra.mxu1 %v3334_v28  ;;  %p3497_p7 = scmp.lt.s32.totalorder %s2499_s30, %s3495_s19  ;;  %p3498_p8 = scmp.lt.s32.totalorder %s3496_s21, %s3490_s29 }
  0x60   : > { %2966 = vmatprep.subr.bf16.mxu1 %v3336_v30  ;;  %p3493_p4 = pneg %p3492_p3 }
  0x61   : > { %p3499_p11 = por %p3498_p8, %p3497_p7 }
  0x63   : > { %2967 = vmatpush3.bf16.msra.mxu1 %v3336_v30  ;;  %p3500_p13 = pnand %p3499_p11, %p3493_p4 }
  0x64   : > { %2968 = vmatprep.subr.bf16.mxu1 %v3338_v32 }
  0x67   : > { %2969 = vmatpush3.bf16.msra.mxu1 %v3338_v32 }
  0x68   : > { %2970 = vmatprep.subr.bf16.mxu1 %v3340_v34 }
  0x6b   : > { %2971 = vmatpush3.bf16.msra.mxu1 %v3340_v34 }
  0x6c   : > { %2972 = vmatprep.subr.bf16.mxu1 %v3342_v36 }
  0x6f   : > { %2973 = vmatpush3.bf16.msra.mxu1 %v3342_v36 }
  0x70   : > { %2974 = vmatprep.subr.bf16.mxu1 %v3344_v40 }
  0x73   : > { %2975 = vmatpush3.bf16.msra.mxu1 %v3344_v40  ;;  %v3363_v40 = vld [vmem:[#allocation2 + $0xc8] sm:$0xff]  }
  0x74   : > { %3000 = vmatprep.subr.bf16.mxu1 %v3346_v45 }
  0xd8   : > { %v490_v11 = vpop.permute.xlu1 %489  ;;  %v484_v12 = vpop.permute.xlu0 %483 }
  0xd9   : > { %vm494_vm1 = vcmp.eq.s32.totalorder %v484_v12, %v481_v10  ;;  %vm496_vm2 = vcmp.eq.s32.totalorder %v490_v11, %v481_v10  ;;  %v3354_v11 = vld [vmem:[#allocation2 + $0x80] sm:$0xff]   ;;  %v3355_v12 = vld [vmem:[#allocation2 + $0x88] sm:$0xff]  }
  0xda   : > { %v2634_v14 = vsel %vm494_vm1, 1.0, %v3567_v13  ;;  %v2636_v17 = vsel %vm496_vm2, 1.0, %v3567_v13 }
  0xdb   : > { %2946 = vmatprep.mubr.msk.f32.mxu0 %vm508_vm0, %v2634_v14  ;;  %v3356_v14 = vld [vmem:[#allocation2 + $0x90] sm:$0xff]  }
  0xdc   : > { %v493_v15 = vpop.permute.xlu1 %492  ;;  %v487_v16 = vpop.permute.xlu0 %486 }
  0xdd   : > { %vm495_vm3 = vcmp.eq.s32.totalorder %v487_v16, %v481_v10  ;;  %vm497_vm4 = vcmp.eq.s32.totalorder %v493_v15, %v481_v10  ;;  %v3353_v10 = vld [vmem:[#allocation2 + $0x78] sm:$0xff]   ;;  %v3358_v16 = vld [vmem:[#allocation2 + $0xa0] sm:$0xff]  }
  0xde   : > { %v2635_v18 = vsel %vm495_vm3, 1.0, %v3567_v13  ;;  %v2637_v20 = vsel %vm497_vm4, 1.0, %v3567_v13  ;;  %v3357_v15 = vld [vmem:[#allocation2 + $0x98] sm:$0xff]  }
  0xdf   : > { %2947 = vmatmul.mubr.msk.f32.vlgmr.msra.gmra.mrb[0].mxu0 %vm508_vm0, %v2635_v18  ;;  %v2661_v18 = vld [vmem:[%s3997_s8] ss:$0 sm:$0xff] }
  0xe0   : > { %2953 = vmatpush3.msra.mxu0 %v610_v8  ;;  %2949 = vmatprep.mubr.msk.f32.mxu0 %vm508_vm0, %v2636_v17  ;;  %v3351_v8 = vld [vmem:[#allocation2 + $0x68] sm:$0xff]  }
  0xe1   : > { %2980 = vmatprep.subr.bf16.mxu0 %v3331_v25  ;;  %v3359_v17 = vld [vmem:[#allocation2 + $0xa8] sm:$0xff]  }
  0xe3   : > { %2950 = vmatmul.mubr.msk.f32.gmra.mrb[2].mxu0 %vm508_vm0, %v2637_v20 }
  0xe4   : > { %2954 = vmatprep.mubr.msk.f32.mxu0 %vm611_vm5, %v606_v19 }
  0xe7   : > { %2955 = vmatmul.mubr.msk.f32.vlgmr.msra.gmra.mrb[4].mxu0 %vm611_vm5, %v607_v21 }
  0xe8   : > { %2957 = vmatprep.mubr.msk.f32.mxu0 %vm611_vm5, %v608_v22  ;;  %2981 = vmatpush3.bf16.msra.mxu0 %v3331_v25 }
  0xe9   : > { %2982 = vmatprep.subr.bf16.mxu0 %v3333_v27 }
  0xeb   : > { %2958 = vmatmul.mubr.msk.f32.gmra.mrb[6].mxu0 %vm611_vm5, %v609_v23 }
  0xec   : > { %2983 = vmatpush3.bf16.msra.mxu0 %v3333_v27 }
  0xed   : > { %2984 = vmatprep.subr.bf16.mxu0 %v3335_v29 }
  0xf0   : > { %2985 = vmatpush3.bf16.msra.mxu0 %v3335_v29 }
  0xf1   : > { %2986 = vmatprep.subr.bf16.mxu0 %v3337_v31 }
  0xf4   : > { %2987 = vmatpush3.bf16.msra.mxu0 %v3337_v31 }
  0xf5   : > { %2988 = vmatprep.subr.bf16.mxu0 %v3339_v33 }
  0xf8   : > { %2989 = vmatpush3.bf16.msra.mxu0 %v3339_v33 }
  0xf9   : > { %2990 = vmatprep.subr.bf16.mxu0 %v3341_v35 }
  0xfc   : > { %2991 = vmatpush3.bf16.msra.mxu0 %v3341_v35 }
  0xfd   : > { %2992 = vmatprep.subr.bf16.mxu0 %v3343_v37 }
 0x100   : > { %2993 = vmatpush3.bf16.msra.mxu0 %v3343_v37  ;;  %v3360_v37 = vld [vmem:[#allocation2 + $0xb0] sm:$0xff]  }
 0x101   : > { %2994 = vmatprep.subr.bf16.mxu0 %v3345_v41 }
 0x104   : > { %2995 = vmatpush3.bf16.msra.mxu0 %v3345_v41  ;;  %v3364_v41 = vld [vmem:[#allocation2 + $0xd0] sm:$0xff]  }
 0x105   : > { %3020 = vmatprep.subr.bf16.mxu0 %v3354_v11 }
 0x1b2   : > { %v2948_v38 = vpop.f32.mrb[0].mxu0 }
 0x1b3   : > { %v587_v39 = vpop.f32.mrb[1].mxu0 }
 0x1b6   : > { %v2951_v42 = vpop.f32.mrb[2].mxu0 }
 0x1b7   : > { %v597_v43 = vpop.f32.mrb[3].mxu0 }
 0x1ba   : > { %v2956_v44 = vpop.f32.mrb[4].mxu0 }
 0x1bb   : > { %v710_v46 = vsub.f32 %v2956_v44, %v2948_v38  ;;  %v690_v47 = vpop.f32.mrb[5].mxu0  ;;  %v3361_v38 = vld [vmem:[#allocation2 + $0xb8] sm:$0xff]  }
 0x1bc   : > { %v3310_v48 = vpack.i.bf16 %v2956_v44, %v690_v47  ;;  %v709_v49 = vsub.f32 %v690_v47, %v587_v39  ;;  %v3362_v39 = vld [vmem:[#allocation2 + $0xc0] sm:$0xff]   ;;  %v3367_v44 = vld [vmem:[#allocation2 + $0xe8] sm:$0xff]  }
 0x1be   : > { %3311 = vrot.lane.b32.xlu0 %v3310_v48, %s3568_s17  ;;  %v2959_v50 = vpop.f32.mrb[6].mxu0 }
 0x1bf   : > { %v712_v51 = vsub.f32 %v2959_v50, %v2951_v42  ;;  %v700_v52 = vpop.f32.mrb[7].mxu0  ;;  %v3365_v42 = vld [vmem:[#allocation2 + $0xd8] sm:$0xff]  }
 0x1c0   : > { %v3315_v53 = vpack.i.bf16 %v2959_v50, %v700_v52  ;;  %v711_v54 = vsub.f32 %v700_v52, %v597_v43  ;;  %v3366_v43 = vld [vmem:[#allocation2 + $0xe0] sm:$0xff]  }
 0x1c2   : > { %3316 = vrot.lane.b32.xlu1 %v3315_v53, %s3568_s17 }
 0x230   : > { %v3312_v55 = vpop.permute.xlu0 %3311 }
 0x231   : > { %v3314_v56 = vunpack.i.h.bf16 %v3312_v55  ;;  %v3313_v57 = vunpack.i.l.bf16 %v3312_v55 }
 0x233   : > { %v729_v58 = vsel %vm611_vm5, %v709_v49, %v3313_v57  ;;  %v730_v59 = vsel %vm611_vm5, %v710_v46, %v3314_v56 }
 0x234   : > { %v3317_v61 = vpop.permute.xlu1 %3316  ;;  %v3835_v62 = vpack.c.bf16 %v730_v59, %v729_v58 }
 0x235   : > { %v3319_v63 = vunpack.i.h.bf16 %v3317_v61  ;;  %v3318_v0 = vunpack.i.l.bf16 %v3317_v61  ;;  %v3368_v61 = vld [vmem:[#allocation2 + $0xf0] sm:$0xff]  }
 0x236   : > { %2976 = vmatprep.mubr.msk.bf16.mxu1 %vm3831_vm6, %v3835_v62  ;;  %2996 = vmatprep.mubr.msk.bf16.mxu0 %vm3831_vm6, %v3835_v62 }
 0x237   : > { %v732_v1 = vsel %vm611_vm5, %v712_v51, %v3319_v63  ;;  %v731_v2 = vsel %vm611_vm5, %v711_v54, %v3318_v0  ;;  %v3369_v63 = vld [vmem:[#allocation2 + $0xf8] sm:$0xff]   ;;  %v3370_v0 = vld [vmem:[#allocation2 + $0x100] sm:$0xff]  }
 0x238   : > { %v3845_v3 = vpack.c.bf16 %v732_v1, %v731_v2  ;;  %v3371_v1 = vld [vmem:[#allocation2 + $0x108] sm:$0xff]   ;;  %v3372_v2 = vld [vmem:[#allocation2 + $0x110] sm:$0xff]  }
 0x23a   : > { %2977 = vmatmul.mubr.msk.bf16.vlgmr.msra.gmra.mrb[0].mxu1 %vm3831_vm6, %v3845_v3  ;;  %2997 = vmatmul.mubr.msk.bf16.vlgmr.msra.gmra.mrb[8].mxu0 %vm3831_vm6, %v3845_v3 }
 0x23b   : > { %3001 = vmatpush3.bf16.msra.mxu1 %v3346_v45  ;;  %3021 = vmatpush3.bf16.msra.mxu0 %v3354_v11  ;;  %v2677_v45 = vld [vmem:[%s3997_s8 + $0x1] ss:$0 sm:$0xff] }
 0x23c   : > { %3002 = vmatprep.subr.bf16.mxu1 %v3347_v4  ;;  %3022 = vmatprep.subr.bf16.mxu0 %v3355_v12 }
 0x23f   : > { %3003 = vmatpush3.bf16.msra.mxu1 %v3347_v4  ;;  %3023 = vmatpush3.bf16.msra.mxu0 %v3355_v12  ;;  %v3373_v4 = vld [vmem:[#allocation2 + $0x118] sm:$0xff]  }
 0x240   : > { %3004 = vmatprep.subr.bf16.mxu1 %v3348_v5  ;;  %3024 = vmatprep.subr.bf16.mxu0 %v3356_v14 }
 0x243   : > { %3005 = vmatpush3.bf16.msra.mxu1 %v3348_v5  ;;  %3025 = vmatpush3.bf16.msra.mxu0 %v3356_v14  ;;  %v3374_v5 = vld [vmem:[#allocation2 + $0x120] sm:$0xff]  }
 0x244   : > { %3006 = vmatprep.subr.bf16.mxu1 %v3349_v6  ;;  %3026 = vmatprep.subr.bf16.mxu0 %v3357_v15 }
 0x247   : > { %3007 = vmatpush3.bf16.msra.mxu1 %v3349_v6  ;;  %3027 = vmatpush3.bf16.msra.mxu0 %v3357_v15  ;;  %v3375_v6 = vld [vmem:[#allocation2 + $0x128] sm:$0xff]  }
 0x248   : > { %3008 = vmatprep.subr.bf16.mxu1 %v3350_v7  ;;  %3028 = vmatprep.subr.bf16.mxu0 %v3358_v16 }
 0x24b   : > { %3009 = vmatpush3.bf16.msra.mxu1 %v3350_v7  ;;  %3029 = vmatpush3.bf16.msra.mxu0 %v3358_v16  ;;  %v2687_v7 = vld [vmem:[%s3997_s8 + $0x2] ss:$0 sm:$0xff] }
 0x24c   : > { %3010 = vmatprep.subr.bf16.mxu1 %v3351_v8  ;;  %3030 = vmatprep.subr.bf16.mxu0 %v3359_v17 }
 0x24f   : > { %3011 = vmatpush3.bf16.msra.mxu1 %v3351_v8  ;;  %3031 = vmatpush3.bf16.msra.mxu0 %v3359_v17 }
 0x250   : > { %3012 = vmatprep.subr.bf16.mxu1 %v3352_v9  ;;  %3032 = vmatprep.subr.bf16.mxu0 %v3360_v37 }
 0x253   : > { %3013 = vmatpush3.bf16.msra.mxu1 %v3352_v9  ;;  %3033 = vmatpush3.bf16.msra.mxu0 %v3360_v37 }
 0x254   : > { %3014 = vmatprep.subr.bf16.mxu1 %v3353_v10  ;;  %3034 = vmatprep.subr.bf16.mxu0 %v3361_v38 }
 0x257   : > { %3015 = vmatpush3.bf16.msra.mxu1 %v3353_v10  ;;  %3035 = vmatpush3.bf16.msra.mxu0 %v3361_v38 }
 0x258   : > { %3040 = vmatprep.subr.bf16.mxu1 %v3362_v39  ;;  %3060 = vmatprep.subr.bf16.mxu0 %v3370_v0 }
 0x30d   : > { %v3856_v19 = vpop.f32.mrb[0].mxu1  ;;  %v2998_v20 = vpop.f32.mrb[8].mxu0 }
 0x30e   : > { %v973_v21 = vadd.f32 %v2998_v20, %v2661_v18  ;;  %v3858_v22 = vpop.f32.mrb[1].mxu1  ;;  %v964_v23 = vpop.f32.mrb[9].mxu0 }
 0x30f   : > { %v965_v24 = vadd.f32 %v2661_v18, %v964_v23  ;;  %v3860_v25 = vpop.f32.mrb[2].mxu1  ;;  %v2999_v26 = vpop.f32.mrb[10].mxu0 }
 0x310   : > { %v976_v27 = vadd.f32 %v2999_v26, %v2661_v18  ;;  %v3862_v28 = vpop.f32.mrb[3].mxu1  ;;  %v967_v29 = vpop.f32.mrb[11].mxu0  ;;  %v981_v31 = vmax.f32 %v973_v21, 0.0  ;;  %v3376_v26 = vld [vmem:[#allocation2 + $0x130] sm:$0xff]  }
 0x311   : > { %v968_v30 = vadd.f32 %v2661_v18, %v967_v29  ;;  %v979_v33 = vmax.f32 %v965_v24, 0.0  ;;  %v3378_v29 = vld [vmem:[#allocation5] sm:$0xff]  }
 0x312   : > { %v982_v32 = vmax.f32 %v976_v27, 0.0  ;;  %v3377_v27 = vld [vmem:[#allocation2 + $0x138] sm:$0xff]  }
 0x313   : > { %v980_v34 = vmax.f32 %v968_v30, 0.0  ;;  %v3386_v30 = vld [vmem:[#allocation2 + $0x140] sm:$0xff]  }
 0x314   : > { %v984_v35 = vpack.c.bf16 %v982_v32, %v981_v31  ;;  %v3387_v31 = vld [vmem:[#allocation2 + $0x148] sm:$0xff]   ;;  %v3388_v32 = vld [vmem:[#allocation2 + $0x150] sm:$0xff]  }
 0x315   : > { %v983_v36 = vpack.c.bf16 %v980_v34, %v979_v33  ;;  %v3389_v33 = vld [vmem:[#allocation2 + $0x158] sm:$0xff]   ;;  %v3390_v34 = vld [vmem:[#allocation2 + $0x160] sm:$0xff]  }
 0x317   : > { %3016 = vmatprep.mubr.bf16.mxu1 %v983_v36  ;;  %v2697_v36 = vld [vmem:[%s3997_s8 + $0x3] ss:$0 sm:$0xff] }
 0x318   : > { %3017 = vmatmul.mubr.bf16.vlgmr.msra.gmra.mrb[4].mxu1 %v984_v35  ;;  %v3391_v35 = vld [vmem:[#allocation2 + $0x168] sm:$0xff]  }
 0x319   : > { %3041 = vmatpush3.bf16.msra.mxu1 %v3362_v39 }
 0x31a   : > { %3042 = vmatprep.subr.bf16.mxu1 %v3363_v40 }
 0x31d   : > { %3043 = vmatpush3.bf16.msra.mxu1 %v3363_v40 }
 0x31e   : > { %3044 = vmatprep.subr.bf16.mxu1 %v3364_v41 }
 0x321   : > { %3045 = vmatpush3.bf16.msra.mxu1 %v3364_v41 }
 0x322   : > { %3046 = vmatprep.subr.bf16.mxu1 %v3365_v42 }
 0x325   : > { %3047 = vmatpush3.bf16.msra.mxu1 %v3365_v42 }
 0x326   : > { %3048 = vmatprep.subr.bf16.mxu1 %v3366_v43 }
 0x329   : > { %3049 = vmatpush3.bf16.msra.mxu1 %v3366_v43 }
 0x32a   : > { %3050 = vmatprep.subr.bf16.mxu1 %v3367_v44 }
 0x32d   : > { %3051 = vmatpush3.bf16.msra.mxu1 %v3367_v44 }
 0x32e   : > { %3052 = vmatprep.subr.bf16.mxu1 %v3368_v61 }
 0x331   : > { %3053 = vmatpush3.bf16.msra.mxu1 %v3368_v61  ;;  %v2707_v61 = vld [vmem:[%s3997_s8 + $0x4] ss:$0 sm:$0xff] }
 0x332   : > { %3054 = vmatprep.subr.bf16.mxu1 %v3369_v63 }
 0x335   : > { %3055 = vmatpush3.bf16.msra.mxu1 %v3369_v63 }
 0x336   : > { %3080 = vmatprep.subr.bf16.mxu1 %v3386_v30 }
 0x3eb   : > { %v3018_v46 = vpop.f32.mrb[4].mxu1 }
 0x3ec   : > { %v1101_v47 = vadd.f32 %v3018_v46, %v2677_v45  ;;  %v1092_v48 = vpop.f32.mrb[5].mxu1 }
 0x3ed   : > { %v1093_v49 = vadd.f32 %v2677_v45, %v1092_v48  ;;  %v3019_v50 = vpop.f32.mrb[6].mxu1 }
 0x3ee   : > { %v1104_v51 = vadd.f32 %v3019_v50, %v2677_v45  ;;  %v1095_v52 = vpop.f32.mrb[7].mxu1  ;;  %v1109_v54 = vmax.f32 %v1101_v47, 0.0 }
 0x3ef   : > { %v1096_v53 = vadd.f32 %v2677_v45, %v1095_v52  ;;  %v1107_v56 = vmax.f32 %v1093_v49, 0.0  ;;  %v3380_v52 = vld [vmem:[#allocation5 + $0x10] sm:$0xff]  }
 0x3f0   : > { %v1110_v55 = vmax.f32 %v1104_v51, 0.0  ;;  %v3379_v51 = vld [vmem:[#allocation5 + $0x8] sm:$0xff]  }
 0x3f1   : > { %v1108_v57 = vmax.f32 %v1096_v53, 0.0  ;;  %v3381_v53 = vld [vmem:[#allocation5 + $0x18] sm:$0xff]  }
 0x3f2   : > { %v1112_v58 = vpack.c.bf16 %v1110_v55, %v1109_v54  ;;  %v3382_v54 = vld [vmem:[#allocation5 + $0x20] sm:$0xff]   ;;  %v3383_v55 = vld [vmem:[#allocation5 + $0x28] sm:$0xff]  }
 0x3f3   : > { %v1111_v59 = vpack.c.bf16 %v1108_v57, %v1107_v56  ;;  %v3384_v56 = vld [vmem:[#allocation5 + $0x30] sm:$0xff]   ;;  %v3385_v57 = vld [vmem:[#allocation5 + $0x38] sm:$0xff]  }
 0x3f5   : > { %3036 = vmatprep.mubr.bf16.mxu0 %v1111_v59  ;;  %v3394_v59 = vld [vmem:[#allocation5 + $0x40] sm:$0xff]  }
 0x3f6   : > { %3037 = vmatmul.mubr.bf16.vlgmr.msra.gmra.mrb[12].mxu0 %v1112_v58  ;;  %v3393_v58 = vld [vmem:[#allocation2 + $0x178] sm:$0xff]  }
 0x3f7   : > { %3061 = vmatpush3.bf16.msra.mxu0 %v3370_v0 }
 0x3f8   : > { %3062 = vmatprep.subr.bf16.mxu0 %v3371_v1 }
 0x3fb   : > { %3063 = vmatpush3.bf16.msra.mxu0 %v3371_v1 }
 0x3fc   : > { %3064 = vmatprep.subr.bf16.mxu0 %v3372_v2 }
 0x3ff   : > { %3065 = vmatpush3.bf16.msra.mxu0 %v3372_v2 }
 0x400   : > { %3066 = vmatprep.subr.bf16.mxu0 %v3373_v4 }
 0x403   : > { %3067 = vmatpush3.bf16.msra.mxu0 %v3373_v4 }
 0x404   : > { %3068 = vmatprep.subr.bf16.mxu0 %v3374_v5 }
 0x407   : > { %3069 = vmatpush3.bf16.msra.mxu0 %v3374_v5 }
 0x408   : > { %3070 = vmatprep.subr.bf16.mxu0 %v3375_v6 }
 0x40b   : > { %3071 = vmatpush3.bf16.msra.mxu0 %v3375_v6 }
 0x40c   : > { %3072 = vmatprep.subr.bf16.mxu0 %v3376_v26 }
 0x40f   : > { %3073 = vmatpush3.bf16.msra.mxu0 %v3376_v26  ;;  %v3401_v26 = vld [vmem:[#allocation5 + $0x78] sm:$0xff]  }
 0x410   : > { %3074 = vmatprep.subr.bf16.mxu0 %v3377_v27 }
 0x413   : > { %3075 = vmatpush3.bf16.msra.mxu0 %v3377_v27 }
 0x414   : > { %3100 = vmatprep.subr.bf16.mxu0 %v3378_v29 }
 0x4c9   : > { %v3038_v8 = vpop.f32.mrb[12].mxu0 }
 0x4ca   : > { %v1229_v9 = vadd.f32 %v3038_v8, %v2687_v7  ;;  %v1220_v10 = vpop.f32.mrb[13].mxu0 }
 0x4cb   : > { %v1221_v11 = vadd.f32 %v2687_v7, %v1220_v10  ;;  %v3039_v12 = vpop.f32.mrb[14].mxu0 }
 0x4cc   : > { %v1232_v14 = vadd.f32 %v3039_v12, %v2687_v7  ;;  %v1223_v15 = vpop.f32.mrb[15].mxu0  ;;  %v1237_v17 = vmax.f32 %v1229_v9, 0.0  ;;  %v3395_v12 = vld [vmem:[#allocation5 + $0x48] sm:$0xff]  }
 0x4cd   : > { %v1224_v16 = vadd.f32 %v2687_v7, %v1223_v15  ;;  %v1235_v20 = vmax.f32 %v1221_v11, 0.0  ;;  %v3397_v15 = vld [vmem:[#allocation5 + $0x58] sm:$0xff]  }
 0x4ce   : > { %v1238_v18 = vmax.f32 %v1232_v14, 0.0  ;;  %v3396_v14 = vld [vmem:[#allocation5 + $0x50] sm:$0xff]  }
 0x4cf   : > { %v1236_v21 = vmax.f32 %v1224_v16, 0.0  ;;  %v3398_v16 = vld [vmem:[#allocation5 + $0x60] sm:$0xff]  }
 0x4d0   : > { %v1240_v23 = vpack.c.bf16 %v1238_v18, %v1237_v17  ;;  %v3399_v17 = vld [vmem:[#allocation5 + $0x68] sm:$0xff]   ;;  %v3400_v18 = vld [vmem:[#allocation5 + $0x70] sm:$0xff]  }
 0x4d1   : > { %v1239_v24 = vpack.c.bf16 %v1236_v21, %v1235_v20  ;;  %v2726_v20 = vld [vmem:[%s3999_s10] ss:$0 sm:$0xff] }
 0x4d3   : > { %3056 = vmatprep.mubr.bf16.mxu1 %v1239_v24 }
 0x4d4   : > { %3057 = vmatmul.mubr.bf16.vlgmr.msra.gmra.mrb[8].mxu1 %v1240_v23 }
 0x4d5   : > { %3081 = vmatpush3.bf16.msra.mxu1 %v3386_v30 }
 0x4d6   : > { %3082 = vmatprep.subr.bf16.mxu1 %v3387_v31 }
 0x4d9   : > { %3083 = vmatpush3.bf16.msra.mxu1 %v3387_v31 }
 0x4da   : > { %3084 = vmatprep.subr.bf16.mxu1 %v3388_v32 }
 0x4dd   : > { %3085 = vmatpush3.bf16.msra.mxu1 %v3388_v32 }
 0x4de   : > { %3086 = vmatprep.subr.bf16.mxu1 %v3389_v33 }
 0x4e1   : > { %3087 = vmatpush3.bf16.msra.mxu1 %v3389_v33 }
 0x4e2   : > { %3088 = vmatprep.subr.bf16.mxu1 %v3390_v34 }
 0x4e5   : > { %3089 = vmatpush3.bf16.msra.mxu1 %v3390_v34 }
 0x4e6   : > { %3090 = vmatprep.subr.bf16.mxu1 %v3391_v35 }
 0x4e9   : > { %3091 = vmatpush3.bf16.msra.mxu1 %v3391_v35 }
 0x5a7   : > { %v3058_v37 = vpop.f32.mrb[8].mxu1 }
 0x5a8   : > { %v1357_v38 = vadd.f32 %v3058_v37, %v2697_v36  ;;  %v1348_v39 = vpop.f32.mrb[9].mxu1 }
 0x5a9   : > { %v1349_v40 = vadd.f32 %v2697_v36, %v1348_v39  ;;  %v3059_v41 = vpop.f32.mrb[10].mxu1  ;;  %v3402_v39 = vld [vmem:[#allocation5 + $0x80] sm:$0xff]  }
 0x5aa   : > { %v1360_v42 = vadd.f32 %v3059_v41, %v2697_v36  ;;  %v1351_v43 = vpop.f32.mrb[11].mxu1  ;;  %v1365_v45 = vmax.f32 %v1357_v38, 0.0  ;;  %v3404_v41 = vld [vmem:[#allocation5 + $0x90] sm:$0xff]  }
 0x5ab   : > { %v1352_v44 = vadd.f32 %v2697_v36, %v1351_v43  ;;  %v1363_v47 = vmax.f32 %v1349_v40, 0.0  ;;  %v3403_v40 = vld [vmem:[#allocation5 + $0x88] sm:$0xff]   ;;  %v3406_v43 = vld [vmem:[#allocation5 + $0xa0] sm:$0xff]  }
 0x5ac   : > { %v1366_v46 = vmax.f32 %v1360_v42, 0.0  ;;  %v3405_v42 = vld [vmem:[#allocation5 + $0x98] sm:$0xff]  }
 0x5ad   : > { %v1364_v48 = vmax.f32 %v1352_v44, 0.0  ;;  %v3407_v44 = vld [vmem:[#allocation5 + $0xa8] sm:$0xff]  }
 0x5ae   : > { %v1368_v49 = vpack.c.bf16 %v1366_v46, %v1365_v45  ;;  %v3408_v45 = vld [vmem:[#allocation5 + $0xb0] sm:$0xff]   ;;  %v3409_v46 = vld [vmem:[#allocation5 + $0xb8] sm:$0xff]  }
 0x5af   : > { %v1367_v50 = vpack.c.bf16 %v1364_v48, %v1363_v47  ;;  %v3410_v47 = vld [vmem:[#allocation5 + $0xc0] sm:$0xff]   ;;  %v3411_v48 = vld [vmem:[#allocation5 + $0xc8] sm:$0xff]  }
 0x5b1   : > { %3076 = vmatprep.mubr.bf16.mxu0 %v1367_v50  ;;  %v2717_v50 = vld [vmem:[%s3997_s8 + $0x5] ss:$0 sm:$0xff] }
 0x5b2   : > { %3077 = vmatmul.mubr.bf16.vlgmr.msra.gmra.mrb[16].mxu0 %v1368_v49 }
 0x5b3   : > { %3101 = vmatpush3.bf16.msra.mxu0 %v3378_v29  ;;  %3116 = vmatprep.mubr.msk.bf16.mxu0 %vm3831_vm6, %v3835_v62  ;;  %v3392_v62 = vld [vmem:[#allocation2 + $0x170] sm:$0xff]  }
 0x5b4   : > { %3102 = vmatprep.subr.bf16.mxu0 %v3379_v51  ;;  %3092 = vmatprep.subr.bf16.mxu1 %v3392_v62 }
 0x5b5   : > { %3093 = vmatpush3.bf16.msra.mxu1 %v3392_v62 }
 0x5b6   : > { %3094 = vmatprep.subr.bf16.mxu1 %v3393_v58 }
 0x5b7   : > { %3103 = vmatpush3.bf16.msra.mxu0 %v3379_v51 }
 0x5b8   : > { %3104 = vmatprep.subr.bf16.mxu0 %v3380_v52 }
 0x5b9   : > { %3095 = vmatpush3.bf16.msra.mxu1 %v3393_v58 }
 0x5ba   : > { %3120 = vmatprep.subr.bf16.mxu1 %v3394_v59 }
 0x5bb   : > { %3105 = vmatpush3.bf16.msra.mxu0 %v3380_v52 }
 0x5bc   : > { %3106 = vmatprep.subr.bf16.mxu0 %v3381_v53 }
 0x5bf   : > { %3107 = vmatpush3.bf16.msra.mxu0 %v3381_v53  ;;  %v3412_v53 = vld [vmem:[#allocation5 + $0xd0] sm:$0xff]  }
 0x5c0   : > { %3108 = vmatprep.subr.bf16.mxu0 %v3382_v54 }
 0x5c3   : > { %3109 = vmatpush3.bf16.msra.mxu0 %v3382_v54 }
 0x5c4   : > { %3110 = vmatprep.subr.bf16.mxu0 %v3383_v55 }
 0x5c7   : > { %3111 = vmatpush3.bf16.msra.mxu0 %v3383_v55 }
 0x5c8   : > { %3112 = vmatprep.subr.bf16.mxu0 %v3384_v56 }
 0x5cb   : > { %3113 = vmatpush3.bf16.msra.mxu0 %v3384_v56 }
 0x5cc   : > { %3114 = vmatprep.subr.bf16.mxu0 %v3385_v57 }
 0x5cf   : > { %3115 = vmatpush3.bf16.msra.mxu0 %v3385_v57 }
 0x5d0   : > { %3140 = vmatprep.subr.bf16.mxu0 %v3402_v39 }
 0x5d2   : > { %3117 = vmatmul.mubr.msk.bf16.vlgmr.msra.gmra.mrb[20].mxu0 %vm3831_vm6, %v3845_v3 }
 0x5d3   : > { %3141 = vmatpush3.bf16.msra.mxu0 %v3402_v39  ;;  %v3422_v39 = vld [vmem:[#allocation5 + $0x120] sm:$0xff]  }
 0x5d4   : > { %3142 = vmatprep.subr.bf16.mxu0 %v3403_v40 }
 0x5d7   : > { %3143 = vmatpush3.bf16.msra.mxu0 %v3403_v40  ;;  %v3423_v40 = vld [vmem:[#allocation5 + $0x128] sm:$0xff]  }
 0x5d8   : > { %3144 = vmatprep.subr.bf16.mxu0 %v3404_v41 }
 0x5db   : > { %3145 = vmatpush3.bf16.msra.mxu0 %v3404_v41  ;;  %v2752_v41 = vld [vmem:[%s3999_s10 + $0x2] ss:$0 sm:$0xff] }
 0x5dc   : > { %3146 = vmatprep.subr.bf16.mxu0 %v3405_v42 }
 0x5df   : > { %3147 = vmatpush3.bf16.msra.mxu0 %v3405_v42 }
 0x5e0   : > { %3148 = vmatprep.subr.bf16.mxu0 %v3406_v43 }
 0x5e3   : > { %3149 = vmatpush3.bf16.msra.mxu0 %v3406_v43 }
 0x5e4   : > { %3150 = vmatprep.subr.bf16.mxu0 %v3407_v44 }
 0x5e7   : > { %3151 = vmatpush3.bf16.msra.mxu0 %v3407_v44 }
 0x5e8   : > { %3152 = vmatprep.subr.bf16.mxu0 %v3408_v45 }
 0x5eb   : > { %3153 = vmatpush3.bf16.msra.mxu0 %v3408_v45 }
 0x5ec   : > { %3154 = vmatprep.subr.bf16.mxu0 %v3409_v46 }
 0x5ef   : > { %3155 = vmatpush3.bf16.msra.mxu0 %v3409_v46 }
 0x685   : > { %v3078_v63 = vpop.f32.mrb[16].mxu0 }
 0x686   : > { %v1485_v0 = vadd.f32 %v3078_v63, %v2707_v61  ;;  %v1476_v1 = vpop.f32.mrb[17].mxu0  ;;  %v3414_v63 = vld [vmem:[#allocation5 + $0xe0] sm:$0xff]  }
 0x687   : > { %v1477_v2 = vadd.f32 %v2707_v61, %v1476_v1  ;;  %v3079_v4 = vpop.f32.mrb[18].mxu0  ;;  %v2742_v1 = vld [vmem:[%s3999_s10 + $0x1] ss:$0 sm:$0xff] }
 0x688   : > { %v1488_v5 = vadd.f32 %v3079_v4, %v2707_v61  ;;  %v1479_v60 = vpop.f32.mrb[19].mxu0  ;;  %v1493_v6 = vmax.f32 %v1485_v0, 0.0  ;;  %v3415_v0 = vld [vmem:[#allocation5 + $0xe8] sm:$0xff]  }
 0x689   : > { %v1480_v3 = vadd.f32 %v2707_v61, %v1479_v60  ;;  %v1491_v8 = vmax.f32 %v1477_v2, 0.0  ;;  %v3413_v61 = vld [vmem:[#allocation5 + $0xd8] sm:$0xff]  }
 0x68a   : > { %v1494_v7 = vmax.f32 %v1488_v5, 0.0 }
 0x68b   : > { %v1492_v9 = vmax.f32 %v1480_v3, 0.0 }
 0x68c   : > { %v1496_v10 = vpack.c.bf16 %v1494_v7, %v1493_v6 }
 0x68d   : > { %v1495_v11 = vpack.c.bf16 %v1492_v9, %v1491_v8 }
 0x68f   : > { %3096 = vmatprep.mubr.bf16.mxu1 %v1495_v11 }
 0x690   : > { %3097 = vmatmul.mubr.bf16.vlgmr.msra.gmra.mrb[12].mxu1 %v1496_v10 }
 0x691   : > { %3121 = vmatpush3.bf16.msra.mxu1 %v3394_v59 }
 0x692   : > { %3122 = vmatprep.subr.bf16.mxu1 %v3395_v12 }
 0x695   : > { %3123 = vmatpush3.bf16.msra.mxu1 %v3395_v12 }
 0x696   : > { %3124 = vmatprep.subr.bf16.mxu1 %v3396_v14 }
 0x699   : > { %3125 = vmatpush3.bf16.msra.mxu1 %v3396_v14 }
 0x69a   : > { %3126 = vmatprep.subr.bf16.mxu1 %v3397_v15 }
 0x69d   : > { %3127 = vmatpush3.bf16.msra.mxu1 %v3397_v15 }
 0x69e   : > { %3128 = vmatprep.subr.bf16.mxu1 %v3398_v16 }
 0x6a1   : > { %3129 = vmatpush3.bf16.msra.mxu1 %v3398_v16  ;;  %v2646_v16 = vld [vmem:[%s3995_s6] ss:$0 sm:$0xff] }
 0x6a2   : > { %3130 = vmatprep.subr.bf16.mxu1 %v3399_v17 }
 0x6a5   : > { %v3118_v21 = vpop.f32.mrb[20].mxu0  ;;  %3131 = vmatpush3.bf16.msra.mxu1 %v3399_v17 }
 0x6a6   : > { %v1733_v23 = vadd.f32 %v3118_v21, %v2726_v20  ;;  %v1724_v24 = vpop.f32.mrb[21].mxu0  ;;  %3132 = vmatprep.subr.bf16.mxu1 %v3400_v18 }
 0x6a7   : > { %v1725_v27 = vadd.f32 %v2726_v20, %v1724_v24  ;;  %v3119_v29 = vpop.f32.mrb[22].mxu0 }
 0x6a8   : > { %v1736_v30 = vadd.f32 %v3119_v29, %v2726_v20  ;;  %v1727_v31 = vpop.f32.mrb[23].mxu0  ;;  %v1741_v33 = vmax.f32 %v1733_v23, 0.0 }
 0x6a9   : > { %v1728_v32 = vadd.f32 %v2726_v20, %v1727_v31  ;;  %3133 = vmatpush3.bf16.msra.mxu1 %v3400_v18  ;;  %v1739_v35 = vmax.f32 %v1725_v27, 0.0  ;;  %v853_v18 = vadd.f32 %v3856_v19, %v2646_v16  ;;  %v856_v20 = vadd.f32 %v3860_v25, %v2646_v16 }
 0x6aa   : > { %v1742_v34 = vmax.f32 %v1736_v30, 0.0  ;;  %3134 = vmatprep.subr.bf16.mxu1 %v3401_v26  ;;  %v848_v27 = vadd.f32 %v2646_v16, %v3862_v28  ;;  %v3416_v28 = vld [vmem:[#allocation5 + $0xf0] sm:$0xff]  }
 0x6ab   : > { %v1740_v36 = vmax.f32 %v1728_v32, 0.0 }
 0x6ac   : > { %v1744_v37 = vpack.c.bf16 %v1742_v34, %v1741_v33  ;;  %v3417_v34 = vld [vmem:[#allocation5 + $0xf8] sm:$0xff]  }
 0x6ad   : > { %v1743_v38 = vpack.c.bf16 %v1740_v36, %v1739_v35  ;;  %3135 = vmatpush3.bf16.msra.mxu1 %v3401_v26  ;;  %v845_v26 = vadd.f32 %v2646_v16, %v3858_v22  ;;  %v3418_v35 = vld [vmem:[#allocation5 + $0x100] sm:$0xff]   ;;  %v3419_v36 = vld [vmem:[#allocation5 + $0x108] sm:$0xff]  }
 0x6ae   : > { %3160 = vmatprep.subr.bf16.mxu1 %v3410_v47  ;;  %3180 = vmatprep.subr.bf16.mxu0 %v3418_v35 }
 0x6af   : > { %3136 = vmatprep.mubr.bf16.mxu1 %v1743_v38  ;;  %v3421_v38 = vld [vmem:[#allocation5 + $0x118] sm:$0xff]  }
 0x6b0   : > { %3137 = vmatmul.mubr.bf16.vlgmr.msra.gmra.mrb[16].mxu1 %v1744_v37  ;;  %v3420_v37 = vld [vmem:[#allocation5 + $0x110] sm:$0xff]  }
 0x6b1   : > { %3161 = vmatpush3.bf16.msra.mxu1 %v3410_v47 }
 0x6b2   : > { %3162 = vmatprep.subr.bf16.mxu1 %v3411_v48 }
 0x6b5   : > { %3163 = vmatpush3.bf16.msra.mxu1 %v3411_v48 }
 0x6b6   : > { %3164 = vmatprep.subr.bf16.mxu1 %v3412_v53 }
 0x6b9   : > { %3165 = vmatpush3.bf16.msra.mxu1 %v3412_v53 }
 0x6ba   : > { %3166 = vmatprep.subr.bf16.mxu1 %v3413_v61 }
 0x6bd   : > { %3167 = vmatpush3.bf16.msra.mxu1 %v3413_v61  ;;  %v3428_v61 = vld [vmem:[#allocation5 + $0x150] sm:$0xff]  }
 0x6be   : > { %3168 = vmatprep.subr.bf16.mxu1 %v3414_v63 }
 0x6c1   : > { %3169 = vmatpush3.bf16.msra.mxu1 %v3414_v63  ;;  %v3429_v63 = vld [vmem:[#allocation5 + $0x158] sm:$0xff]  }
 0x6c2   : > { %3170 = vmatprep.subr.bf16.mxu1 %v3415_v0 }
 0x6c5   : > { %3171 = vmatpush3.bf16.msra.mxu1 %v3415_v0  ;;  %v3430_v0 = vld [vmem:[#allocation5 + $0x160] sm:$0xff]  }
 0x6c6   : > { %3172 = vmatprep.subr.bf16.mxu1 %v3416_v28 }
 0x6c9   : > { %3173 = vmatpush3.bf16.msra.mxu1 %v3416_v28 }
 0x6ca   : > { %3174 = vmatprep.subr.bf16.mxu1 %v3417_v34 }
 0x6cd   : > { %3175 = vmatpush3.bf16.msra.mxu1 %v3417_v34 }
 0x763   : > { %v3098_v49 = vpop.f32.mrb[12].mxu1 }
 0x764   : > { %v1604_v51 = vpop.f32.mrb[13].mxu1  ;;  %v1613_v54 = vadd.f32 %v3098_v49, %v2717_v50 }
 0x765   : > { %v3099_v52 = vpop.f32.mrb[14].mxu1  ;;  %v1605_v57 = vadd.f32 %v2717_v50, %v1604_v51 }
 0x766   : > { %v1616_v55 = vadd.f32 %v3099_v52, %v2717_v50  ;;  %v1607_v56 = vpop.f32.mrb[15].mxu1 }
 0x767   : > { %v1608_v62 = vadd.f32 %v2717_v50, %v1607_v56  ;;  %v3424_v56 = vld [vmem:[#allocation5 + $0x130] sm:$0xff]  }
 0x768   : > { %v3325_v58 = vpack.i.bf16 %v1616_v55, %v1613_v54 }
 0x769   : > { %v3320_v59 = vpack.i.bf16 %v1608_v62, %v1605_v57  ;;  %v3425_v57 = vld [vmem:[#allocation5 + $0x138] sm:$0xff]   ;;  %v3569_v62 = vmov 0.0|0.0  }
 0x76a   : > { %3326 = vrot.lane.b32.xlu1 %v3325_v58, %s3568_s17  ;;  %v3426_v58 = vld [vmem:[#allocation5 + $0x140] sm:$0xff]  }
 0x76b   : > { %3321 = vrot.lane.b32.xlu0 %v3320_v59, %s3568_s17  ;;  %v3427_v59 = vld [vmem:[#allocation5 + $0x148] sm:$0xff]   ;;  %3200 = vmatprep.subr.bf16.mxu1 %v3426_v58  ;;  %s2793_s17 = sshll.u32 %s3658_s25, 7 }
 0x76c   : > { %s3941_s27 = scalar_lea.hbm %s4000_s11, %s2793_s17 }
 0x783   : > { %v3138_v2 = vpop.f32.mrb[16].mxu1 }
 0x784   : > { %v1861_v4 = vadd.f32 %v3138_v2, %v2742_v1  ;;  %v1852_v5 = vpop.f32.mrb[17].mxu1  ;;  %v2762_v2 = vld [vmem:[%s3999_s10 + $0x3] ss:$0 sm:$0xff] }
 0x785   : > { %v1853_v60 = vadd.f32 %v2742_v1, %v1852_v5  ;;  %v3139_v3 = vpop.f32.mrb[18].mxu1 }
 0x786   : > { %v1864_v6 = vadd.f32 %v3139_v3, %v2742_v1  ;;  %v1855_v7 = vpop.f32.mrb[19].mxu1  ;;  %v1869_v9 = vmax.f32 %v1861_v4, 0.0 }
 0x787   : > { %v1856_v8 = vadd.f32 %v2742_v1, %v1855_v7  ;;  %v1867_v11 = vmax.f32 %v1853_v60, 0.0  ;;  %v3431_v1 = vld [vmem:[#allocation5 + $0x168] sm:$0xff]  }
 0x788   : > { %v1870_v10 = vmax.f32 %v1864_v6, 0.0 }
 0x789   : > { %v1868_v12 = vmax.f32 %v1856_v8, 0.0 }
 0x78a   : > { %v1872_v14 = vpack.c.bf16 %v1870_v10, %v1869_v9 }
 0x78b   : > { %v1871_v15 = vpack.c.bf16 %v1868_v12, %v1867_v11 }
 0x78d   : > { %3156 = vmatprep.mubr.bf16.mxu0 %v1871_v15 }
 0x78e   : > { %3157 = vmatmul.mubr.bf16.vlgmr.msra.gmra.mrb[24].mxu0 %v1872_v14 }
 0x78f   : > { %3181 = vmatpush3.bf16.msra.mxu0 %v3418_v35 }
 0x790   : > { %3182 = vmatprep.subr.bf16.mxu0 %v3419_v36 }
 0x793   : > { %3183 = vmatpush3.bf16.msra.mxu0 %v3419_v36 }
 0x794   : > { %3184 = vmatprep.subr.bf16.mxu0 %v3420_v37 }
 0x797   : > { %3185 = vmatpush3.bf16.msra.mxu0 %v3420_v37 }
 0x798   : > { %3186 = vmatprep.subr.bf16.mxu0 %v3421_v38 }
 0x79b   : > { %3187 = vmatpush3.bf16.msra.mxu0 %v3421_v38 }
 0x79c   : > { %3188 = vmatprep.subr.bf16.mxu0 %v3422_v39 }
 0x79f   : > { %3189 = vmatpush3.bf16.msra.mxu0 %v3422_v39 }
 0x7a0   : > { %3190 = vmatprep.subr.bf16.mxu0 %v3423_v40 }
 0x7a3   : > { %3191 = vmatpush3.bf16.msra.mxu0 %v3423_v40 }
 0x7a4   : > { %3192 = vmatprep.subr.bf16.mxu0 %v3424_v56 }
 0x7a7   : > { %3193 = vmatpush3.bf16.msra.mxu0 %v3424_v56 }
 0x7a8   : > { %3194 = vmatprep.subr.bf16.mxu0 %v3425_v57 }
 0x7ab   : > { %3195 = vmatpush3.bf16.msra.mxu0 %v3425_v57 }
 0x7ac   : > { %3235 = vmatprep.subr.bf16.mxu0 %v3569_v62 }
 0x7dc   : > { %v3327_v17 = vpop.permute.xlu1 %3326 }
 0x7dd   : > { %v3329_v21 = vunpack.i.h.bf16 %v3327_v17  ;;  %v3328_v23 = vunpack.i.l.bf16 %v3327_v17  ;;  %v3322_v24 = vpop.permute.xlu0 %3321  ;;  %v3432_v17 = vld [vmem:[#allocation5 + $0x170] sm:$0xff]  }
 0x7de   : > { %v3324_v29 = vunpack.i.h.bf16 %v3322_v24  ;;  %v3323_v30 = vunpack.i.l.bf16 %v3322_v24 }
 0x7df   : > { %v3901_v31 = vsel %vm611_vm5, %v856_v20, %v3329_v21  ;;  %v3904_v32 = vsel %vm611_vm5, %v853_v18, %v3328_v23  ;;  %v3433_v18 = vld [vmem:[#allocation5 + $0x178] sm:$0xff]   ;;  %v2399_v20 = vld [vmem:[%s3993_s4] sm:$0xff] }
 0x7e0   : > { %v3239_v19 = vpack.c.bf16 %v3901_v31, %v3904_v32  ;;  %v3909_v25 = vsel %vm611_vm5, %v845_v26, %v3323_v30  ;;  %v3912_v33 = vsel %vm611_vm5, %v848_v27, %v3324_v29  ;;  %v2772_v21 = vld [vmem:[%s3999_s10 + $0x4] ss:$0 sm:$0xff] }
 0x7e1   : > { %v3236_v22 = vpack.c.bf16 %v3912_v33, %v3909_v25 }
 0x861   : > { %v3158_v42 = vpop.f32.mrb[24].mxu0 }
 0x862   : > { %v1989_v43 = vadd.f32 %v3158_v42, %v2752_v41  ;;  %v1980_v44 = vpop.f32.mrb[25].mxu0 }
 0x863   : > { %v1981_v45 = vadd.f32 %v2752_v41, %v1980_v44  ;;  %v3159_v46 = vpop.f32.mrb[26].mxu0 }
 0x864   : > { %v1992_v47 = vadd.f32 %v3159_v46, %v2752_v41  ;;  %v1983_v48 = vpop.f32.mrb[27].mxu0  ;;  %v1997_v50 = vmax.f32 %v1989_v43, 0.0 }
 0x865   : > { %v1984_v49 = vadd.f32 %v2752_v41, %v1983_v48  ;;  %v1995_v52 = vmax.f32 %v1981_v45, 0.0 }
 0x866   : > { %v1998_v51 = vmax.f32 %v1992_v47, 0.0 }
 0x867   : > { %v1996_v53 = vmax.f32 %v1984_v49, 0.0 }
 0x868   : > { %v2000_v54 = vpack.c.bf16 %v1998_v51, %v1997_v50 }
 0x869   : > { %v1999_v55 = vpack.c.bf16 %v1996_v53, %v1995_v52 }
 0x86b   : > { %3176 = vmatprep.mubr.bf16.mxu1 %v1999_v55 }
 0x86c   : > { %3177 = vmatmul.mubr.bf16.vlgmr.msra.gmra.mrb[20].mxu1 %v2000_v54 }
 0x86d   : > { %3201 = vmatpush3.bf16.msra.mxu1 %v3426_v58 }
 0x86e   : > { %3202 = vmatprep.subr.bf16.mxu1 %v3427_v59 }
 0x871   : > { %3203 = vmatpush3.bf16.msra.mxu1 %v3427_v59 }
 0x872   : > { %3204 = vmatprep.subr.bf16.mxu1 %v3428_v61 }
 0x875   : > { %3205 = vmatpush3.bf16.msra.mxu1 %v3428_v61 }
 0x876   : > { %3206 = vmatprep.subr.bf16.mxu1 %v3429_v63 }
 0x879   : > { %3207 = vmatpush3.bf16.msra.mxu1 %v3429_v63 }
 0x87a   : > { %3208 = vmatprep.subr.bf16.mxu1 %v3430_v0 }
 0x87d   : > { %3209 = vmatpush3.bf16.msra.mxu1 %v3430_v0 }
 0x87e   : > { %3210 = vmatprep.subr.bf16.mxu1 %v3431_v1 }
 0x881   : > { %3211 = vmatpush3.bf16.msra.mxu1 %v3431_v1 }
 0x882   : > { %3212 = vmatprep.subr.bf16.mxu1 %v3432_v17 }
 0x885   : > { %3213 = vmatpush3.bf16.msra.mxu1 %v3432_v17 }
 0x886   : > { %3214 = vmatprep.subr.bf16.mxu1 %v3433_v18 }
 0x889   : > { %3215 = vmatpush3.bf16.msra.mxu1 %v3433_v18 }
 0x93f   : > { %v3178_v4 = vpop.f32.mrb[20].mxu1 }
 0x940   : > { %v2117_v5 = vadd.f32 %v3178_v4, %v2762_v2  ;;  %v2108_v60 = vpop.f32.mrb[21].mxu1 }
 0x941   : > { %v2109_v3 = vadd.f32 %v2762_v2, %v2108_v60  ;;  %v3179_v6 = vpop.f32.mrb[22].mxu1 }
 0x942   : > { %v2120_v7 = vadd.f32 %v3179_v6, %v2762_v2  ;;  %v2111_v8 = vpop.f32.mrb[23].mxu1  ;;  %v2125_v10 = vmax.f32 %v2117_v5, 0.0 }
 0x943   : > { %v2112_v9 = vadd.f32 %v2762_v2, %v2111_v8  ;;  %v2123_v12 = vmax.f32 %v2109_v3, 0.0 }
 0x944   : > { %v2126_v11 = vmax.f32 %v2120_v7, 0.0 }
 0x945   : > { %v2124_v14 = vmax.f32 %v2112_v9, 0.0 }
 0x946   : > { %v2128_v15 = vpack.c.bf16 %v2126_v11, %v2125_v10 }
 0x947   : > { %v2127_v16 = vpack.c.bf16 %v2124_v14, %v2123_v12 }
 0x949   : > { %3196 = vmatprep.mubr.bf16.mxu0 %v2127_v16 }
 0x94a   : > { %3197 = vmatmul.mubr.bf16.vlgmr.msra.gmra.mrb[28].mxu0 %v2128_v15 }
 0x94b   : > { %3237 = vmatpush3.bf16.msra.mxu0 %v3236_v22  ;;  %3228 = vmatprep.mubr.msk.f32.mxu0 %vm3570_vm8, %v3567_v13 }
 0x94c   : > { %3238 = vmatprep.subr.bf16.mxu0 %v3569_v62 }
 0x94f   : > { %3240 = vmatpush3.bf16.msra.mxu0 %v3239_v19 }
 0x952   : > { %3229 = vmatmul.mubr.msk.f32.vlgmr.msra.gmra.mrb[32].mxu0 %vm2400_vm7, %v2399_v20 }
 0xa1d   : > { %v3198_v23 = vpop.f32.mrb[28].mxu0 }
 0xa1e   : > { %v2245_v24 = vadd.f32 %v3198_v23, %v2772_v21  ;;  %v2236_v26 = vpop.f32.mrb[29].mxu0 }
 0xa1f   : > { %v2237_v27 = vadd.f32 %v2772_v21, %v2236_v26  ;;  %v3199_v29 = vpop.f32.mrb[30].mxu0 }
 0xa20   : > { %v2248_v30 = vadd.f32 %v3199_v29, %v2772_v21  ;;  %v2239_v31 = vpop.f32.mrb[31].mxu0  ;;  %v2253_v19 = vmax.f32 %v2245_v24, 0.0 }
 0xa21   : > { %v2240_v32 = vadd.f32 %v2772_v21, %v2239_v31  ;;  %v2251_v33 = vmax.f32 %v2237_v27, 0.0 }
 0xa22   : > { %v2254_v25 = vmax.f32 %v2248_v30, 0.0 }
 0xa23   : > { %v2252_v22 = vmax.f32 %v2240_v32, 0.0 }
 0xa24   : > { %v2256_v13 = vpack.c.bf16 %v2254_v25, %v2253_v19 }
 0xa25   : > { %v2255_v28 = vpack.c.bf16 %v2252_v22, %v2251_v33  ;;  %v2470_v34 = vpop.f32.mrb[32].mxu0 }
 0xa26   : > { %2474 = vst.msk [vmem:[%s451_s20] sm:$0xff] %vm508_vm0, %v2470_v34  ;;  %v3230_v35 = vpop.f32.mrb[33].mxu0 }
 0xa27   : > { %3216 = vmatprep.mubr.bf16.mxu1 %v2255_v28 }
 0xa28   : > { %3217 = vmatmul.mubr.bf16.vlgmr.msra.gmra.mrb[24].mxu1 %v2256_v13 }
 0xa29   : > { %3503 = shalt.err (!%p3500_p13)
}
 0xa2a   : > { %s3504_s25 = scalar_lea.hbm %s3941_s27, 128  ;;  %s3508_s20 = scalar_lea.hbm %s4000_s11, 256 }
 0xa2b   : > { %p3505_p5 = scmp.ne.s32.totalorder %s3941_s27, %s3504_s25  ;;  %p3509_p9 = scmp.lt.u32.totalorder %s3941_s27, %s4000_s11 }
 0xa2c   : > { %p3510_p12 = scmp.lt.u32.totalorder %s3508_s20, %s3504_s25  ;;  %p3512_p1 = scmp.lt.u32.totalorder %s3504_s25, %s3941_s27 }
 0xa2d   : > { %p3506_p0 = pnand %p3505_p5, %p4028_p2 }
 0xa2e   : > { %p3511_p10 = por %p3510_p12, %p3509_p9 }
 0xa2f   : > { %p3507_p6 = pneg %p3506_p0 }
 0xa30   : > { %p3513_p3 = por %p3512_p1, %p3511_p10 }
 0xa32   : > { %p3514_p4 = pnand %p3513_p3, %p3507_p6 }
 0xa34   : > { %3517 = shalt.err (!%p3514_p4)
}
 0xa35   : > { %3249 = dma.vmem_to_hbm [thread:$0]  (%p4028_p2), %s2499_s30, 128, %s3941_s27, %s2480_s28   ;;  %v2782_v36 = vld [vmem:[%s3999_s10 + $0x5] ss:$0 sm:$0xff] }
 0xa36   : > { %s473_s21 = scalar_lea.vmem %s4001_s12, %s2630_s15 }
 0xafb   : > { %v3218_v37 = vpop.f32.mrb[24].mxu1 }
 0xafc   : > { %v2364_v38 = vpop.f32.mrb[25].mxu1  ;;  %v2373_v43 = vadd.f32 %v3218_v37, %v2782_v36 }
 0xafd   : > { %v2365_v39 = vadd.f32 %v2782_v36, %v2364_v38  ;;  %v3219_v40 = vpop.f32.mrb[26].mxu1 }
 0xafe   : > { %v2367_v41 = vpop.f32.mrb[27].mxu1  ;;  %v2376_v44 = vadd.f32 %v3219_v40, %v2782_v36  ;;  %2477 = vst.msk [vmem:[%s473_s21 + $0x10] sm:$0xff] %vm611_vm5, %v2373_v43 }
 0xaff   : > { %2475 = vst.msk [vmem:[%s473_s21] sm:$0xff] %vm611_vm5, %v2365_v39  ;;  %v2368_v42 = vadd.f32 %v2782_v36, %v2367_v41 }
 0xb00   : > { %2478 = vst.msk [vmem:[%s473_s21 + $0x18] sm:$0xff] %vm611_vm5, %v2376_v44 }
 0xb01   : > { %2476 = vst.msk [vmem:[%s473_s21 + $0x8] sm:$0xff] %vm611_vm5, %v2368_v42 }
 0xb02 PF: > { %s4029_s13 = sld [smem:[#allocation13_spill]]  ;;  %s4030_s14 = sld [smem:[#allocation11_spill]] }
 0xb03   : > { %s4031_s30 = sld [smem:[#allocation16_spill]] }
 0xb08   : > { %p3266_p2 = scmp.ge.s32.totalorder %s4029_s13, 2  ;;  %s2514_s15 = sand.u32 1, %s4030_s14  }
 0xb09   : > { %p4032_p7 = scmp.ne.s32.totalorder %s4031_s30, 0  ;;  %s2515_s27 = scalar_lea.sflag [#allocation4], %s2514_s15 }
 0xb0b   : > { %p3259_p8 = pnand %p3266_p2, %p4032_p7 }
 0xb0d   : > { %3543 = dma.done.wait (!%p3259_p8), %s2515_s27, 128  }
 0xb0e   : > { %3545 = vsyncadd (!%p3259_p8), %s2515_s27, 4294967168  ;;  %s4033_s24 = sld [smem:[#allocation14_spill]]  ;;  %s4034_s28 = sld [smem:[#allocation12_spill]] }
 0xb0f   : > { %s4035_s23 = sld [smem:[#allocation15_spill]]  ;;  %s4036_s21 = smov %s3552_s22 }
 0xb14   : > { %p25_p11 = scmp.ge.s32.totalorder %s4033_s24, 4   ;;  %s4037_s22 = smov %s4034_s28 }
 0xb16   :  { %27 = sbr.rel (!%p25_p11) target bundleno = 5 (0x5), region = 143 }
 0xb1d   :  { %2528 = vsyncpa [#allocation3], 1 }
 0xb1e   :  { %2530 = vsyncpa [#allocation3 + $0x1], 1 }
 0xb1f   :  { %2531 = vsyncpa [#allocation6], 1 }
 0xb20   :  { %2532 = vsyncpa [#allocation4], 1 }
 0xb21   :  { %2534 = vsyncpa [#allocation4 + $0x1], 1 }

</bundles_post_ra>
